<compile_context>
chip_gen: v5e
topology: v5e:2x2
jax: 0.10.0
libtpu: 0.0.40
codegen_flags: <defaults>
</compile_context>

<pallas_src>
import functools

import jax
import jax.numpy as jnp
from jax import lax
from jax.experimental import pallas as pl
from jax.experimental.pallas import tpu as pltpu


# ----------------------------- in-kernel helpers -----------------------------

def _layernorm(x, gamma, beta, eps=1e-5):
    # x: (n, d) f32; gamma/beta: (1, d) f32. Matches torch.nn.LayerNorm (biased var).
    mean = jnp.mean(x, axis=-1, keepdims=True)
    xc = x - mean
    var = jnp.mean(xc * xc, axis=-1, keepdims=True)
    return xc * lax.rsqrt(var + eps) * gamma + beta


# ------------------ fused kernel: ln_1 + attn + ln_2 + MLP --------------------

def fused_block_kernel(x_ref, wqkv_ref, bqkv_ref, wout_ref, bout_ref,
                       g1_ref, b1_ref, wfc_ref, bfc_ref, wproj_ref, bproj_ref,
                       g2_ref, b2_ref, o_ref, *, num_heads, scale):
    fpb, hw, d = x_ref.shape            # F frames per grid step, HW tokens per frame
    hd = d // num_heads
    tok = fpb * hw

    x = x_ref[...].reshape(tok, d)      # (tok, D) f32 residual stream

    # ---- ln_1 + fused QKV projection (bf16 operands, f32 accumulation) ----
    xn = _layernorm(x, g1_ref[...], b1_ref[...])
    qkv = jnp.dot(xn.astype(jnp.bfloat16), wqkv_ref[...],
                  preferred_element_type=jnp.float32) + bqkv_ref[...]   # (tok, 3D)

    q = qkv[:, 0 * d:1 * d] * scale      # scale applied once, full-lane pass
    k = qkv[:, 1 * d:2 * d]              # q/k/v splits are 128-lane aligned (cheap)
    v = qkv[:, 2 * d:3 * d]
    qf = q.reshape(fpb, hw, d).astype(jnp.bfloat16)
    kf = k.reshape(fpb, hw, d).astype(jnp.bfloat16)
    vf = v.reshape(fpb, hw, d).astype(jnp.bfloat16)

    wout = wout_ref[...]                 # (D_in, D_out) bf16, sublane-sliced per head

    # ---- per-frame multi-head attention; frames batched inside every dot,
    #      out_proj accumulated per head (no concatenate of head outputs) ----
    proj = jnp.zeros((tok, d), jnp.float32)
    for h in range(num_heads):                                   # static & small
        lo, hi = h * hd, (h + 1) * hd
        s = jnp.einsum('fqc,fkc->fqk', qf[..., lo:hi], kf[..., lo:hi],
                       preferred_element_type=jnp.float32)        # (F, HW, HW)
        m = jnp.max(s, axis=-1, keepdims=True)
        e = jnp.exp(s - m)
        p = e / jnp.sum(e, axis=-1, keepdims=True)                # exact softmax
        oh = jnp.einsum('fqk,fkc->fqc', p.astype(jnp.bfloat16), vf[..., lo:hi],
                        preferred_element_type=jnp.float32)       # (F, HW, hd)
        proj = proj + jnp.dot(oh.reshape(tok, hd).astype(jnp.bfloat16),
                              wout[lo:hi, :],
                              preferred_element_type=jnp.float32)
    x1 = x + proj + bout_ref[...]        # attention residual (f32)

    # ---- ln_2 + MLP, fused in the same kernel (no HBM round trip) ----
    xn2 = _layernorm(x1, g2_ref[...], b2_ref[...])
    hmid = jnp.dot(xn2.astype(jnp.bfloat16), wfc_ref[...],
                   preferred_element_type=jnp.float32) + bfc_ref[...]   # (tok, 4D)
    # QuickGELU with a single transcendental: x*sigmoid(1.702x) == 0.5x(1+tanh(0.851x))
    hmid = 0.5 * hmid * (1.0 + jnp.tanh(0.851 * hmid))
    y = jnp.dot(hmid.astype(jnp.bfloat16), wproj_ref[...],
                preferred_element_type=jnp.float32) + bproj_ref[...]    # (tok, D)

    o_ref[...] = (x1 + y).reshape(fpb, hw, d).astype(o_ref.dtype)


# --------------------------------- wrapper -----------------------------------

def _pick_frames_per_step(num_frames, hw, target_tokens=1024, min_steps=2):
    """Largest divisor F of num_frames with F*hw <= target_tokens, while keeping at
    least `min_steps` grid steps when possible (v7x has 2 TensorCores)."""
    divisors = [f for f in range(1, num_frames + 1) if num_frames % f == 0]
    fit = [f for f in divisors if f * hw <= target_tokens] or [1]
    f = max(fit)
    if num_frames // f < min_steps:
        smaller = [d for d in divisors if num_frames // d >= min_steps]
        if smaller:
            f = max(smaller)
    return f


def residual_attention_block(x, size, params, *, num_heads,
                             frames_per_step=None, target_tokens=1024):
    """x: (B, N, D) f32 with N = T*H*W; size = (T, H, W). Returns (y, size)."""
    B, N, D = x.shape
    T, H, W = size
    HW = H * W
    assert N == T * HW, "N must equal T*H*W"
    assert D % num_heads == 0
    BT = B * T
    scale = float((D // num_heads) ** -0.5)
    bf16 = jnp.bfloat16
    f32 = jnp.float32

    # Weights pre-transposed to (in, out) once host-side and stored bf16 (halves
    # HBM/VMEM traffic; MXU runs bf16 x bf16 -> f32).
    wqkv = params["in_proj_weight"].T.astype(bf16)      # (D, 3D)
    bqkv = params["in_proj_bias"].reshape(1, 3 * D).astype(f32)
    wout = params["out_proj_weight"].T.astype(bf16)     # (D, D); rows sliced per head
    bout = params["out_proj_bias"].reshape(1, D).astype(f32)
    wfc = params["c_fc_weight"].T.astype(bf16)          # (D, 4D)
    bfc = params["c_fc_bias"].reshape(1, 4 * D).astype(f32)
    wproj = params["c_proj_weight"].T.astype(bf16)      # (4D, D)
    bproj = params["c_proj_bias"].reshape(1, D).astype(f32)
    g1 = params["ln1_weight"].reshape(1, D).astype(f32)
    b1 = params["ln1_bias"].reshape(1, D).astype(f32)
    g2 = params["ln2_weight"].reshape(1, D).astype(f32)
    b2 = params["ln2_bias"].reshape(1, D).astype(f32)

    if frames_per_step is None:
        frames_per_step = _pick_frames_per_step(BT, HW, target_tokens)
    F = frames_per_step
    assert BT % F == 0, "frames_per_step must divide B*T"
    grid = (BT // F,)

    xf = x.reshape(BT, HW, D)           # 'b (t hw) c -> (b t) hw c' (pure reshape)
    kern = functools.partial(fused_block_kernel, num_heads=num_heads, scale=scale)

    def _full(shape):                   # resident (constant-index) block
        return pl.BlockSpec(shape, lambda i, _n=len(shape): (0,) * _n)

    y = pl.pallas_call(
        kern,
        out_shape=jax.ShapeDtypeStruct((BT, HW, D), x.dtype),
        grid=grid,
        in_specs=[
            pl.BlockSpec((F, HW, D), lambda i: (i, 0, 0)),   # F-frame group of x
            _full((D, 3 * D)), _full((1, 3 * D)),            # Wqkv, bqkv
            _full((D, D)), _full((1, D)),                    # Wout^T, bout
            _full((1, D)), _full((1, D)),                    # ln1 gamma/beta
            _full((D, 4 * D)), _full((1, 4 * D)),            # Wfc^T, bfc
            _full((4 * D, D)), _full((1, D)),                # Wproj^T, bproj
            _full((1, D)), _full((1, D)),                    # ln2 gamma/beta
        ],
        out_specs=pl.BlockSpec((F, HW, D), lambda i: (i, 0, 0)),
        compiler_params=pltpu.CompilerParams(
            dimension_semantics=("parallel",),
            vmem_limit_bytes=48 * 1024 * 1024),
    )(xf, wqkv, bqkv, wout, bout, g1, b1, wfc, bfc, wproj, bproj, g2, b2)

    return y.reshape(B, N, D), size


# ------------------------------ pure-JAX reference ----------------------------

def ref_block(x, size, params, num_heads, mm_dtype=None):
    """mm_dtype=None: full-f32 reference.  mm_dtype=bf16: casts every matmul's operands
    to bf16 (f32 accumulation), mirroring the kernel's precision choices."""
    T, H, W = size
    B, N, D = x.shape
    HW = H * W
    hd = D // num_heads
    scale = hd ** (-0.5)
    eps = 1e-5
    hp = jax.lax.Precision.HIGHEST

    def mm(a, w_torch):                  # a: (..., K); w_torch: (O, K) -> (..., O)
        if mm_dtype is not None:
            a = a.astype(mm_dtype)
            w_torch = w_torch.astype(mm_dtype)
        return jnp.einsum("...k,ok->...o", a, w_torch,
                          preferred_element_type=jnp.float32, precision=hp)

    def ln(z, g, b):
        mu = jnp.mean(z, -1, keepdims=True)
        var = jnp.mean((z - mu) ** 2, -1, keepdims=True)
        return (z - mu) * jax.lax.rsqrt(var + eps) * g + b

    xn = ln(x, params["ln1_weight"], params["ln1_bias"])
    qkv = mm(xn, params["in_proj_weight"]) + params["in_proj_bias"]
    qkv = qkv.reshape(B * T, HW, 3, num_heads, hd)
    qkv = jnp.transpose(qkv, (2, 0, 3, 1, 4))            # (3, BT, heads, HW, hd)
    q, k, v = qkv[0] * scale, qkv[1], qkv[2]
    if mm_dtype is not None:
        q, k, v = q.astype(mm_dtype), k.astype(mm_dtype), v.astype(mm_dtype)
    attn = jnp.einsum("bhqd,bhkd->bhqk", q, k,
                      preferred_element_type=jnp.float32, precision=hp)
    attn = jax.nn.softmax(attn, axis=-1)
    if mm_dtype is not None:
        attn = attn.astype(mm_dtype)
    o = jnp.einsum("bhqk,bhkd->bhqd", attn, v,
                   preferred_element_type=jnp.float32, precision=hp)
    o = jnp.transpose(o, (0, 2, 1, 3)).reshape(B, N, D)
    o = mm(o, params["out_proj_weight"]) + params["out_proj_bias"]
    x = x + o

    xn2 = ln(x, params["ln2_weight"], params["ln2_bias"])
    h = mm(xn2, params["c_fc_weight"]) + params["c_fc_bias"]
    h = h * jax.nn.sigmoid(1.702 * h)
    y = mm(h, params["c_proj_weight"]) + params["c_proj_bias"]
    return x + y


# ------------------------------------ main ------------------------------------

if __name__ == "__main__":
    # Small, lane-dense example: d_model=128, 4 heads, 2 batches x 2 frames of 4x4 tokens.
    B, T, H, W = 2, 2, 4, 4
    D, NHEADS = 128, 4
    N = T * H * W

    key = jax.random.PRNGKey(0)
    keys = jax.random.split(key, 13)

    def xavier(k, shape):
        fan_out, fan_in = shape
        lim = (6.0 / (fan_in + fan_out)) ** 0.5
        return jax.random.uniform(k, shape, minval=-lim, maxval=lim, dtype=jnp.float32)

    x = jax.random.normal(keys[0], (B, N, D), dtype=jnp.float32)
    params = {
        "in_proj_weight": xavier(keys[1], (3 * D, D)),
        "in_proj_bias": 0.02 * jax.random.normal(keys[2], (3 * D,), dtype=jnp.float32),
        "out_proj_weight": xavier(keys[3], (D, D)),
        "out_proj_bias": 0.02 * jax.random.normal(keys[4], (D,), dtype=jnp.float32),
        "ln1_weight": 1.0 + 0.05 * jax.random.normal(keys[5], (D,), dtype=jnp.float32),
        "ln1_bias": 0.05 * jax.random.normal(keys[6], (D,), dtype=jnp.float32),
        "ln2_weight": 1.0 + 0.05 * jax.random.normal(keys[7], (D,), dtype=jnp.float32),
        "ln2_bias": 0.05 * jax.random.normal(keys[8], (D,), dtype=jnp.float32),
        "c_fc_weight": xavier(keys[9], (4 * D, D)),
        "c_fc_bias": 0.02 * jax.random.normal(keys[10], (4 * D,), dtype=jnp.float32),
        "c_proj_weight": xavier(keys[11], (D, 4 * D)),
        "c_proj_bias": 0.02 * jax.random.normal(keys[12], (D,), dtype=jnp.float32),
    }

    y, size_out = residual_attention_block(x, (T, H, W), params, num_heads=NHEADS)
    y = jax.block_until_ready(y)

    assert y.shape == (B, N, D)
    assert size_out == (T, H, W)

    # Tight check vs. a reference with identical bf16 matmul-operand precision.
    y_ref_bf = ref_block(x, (T, H, W), params, NHEADS, mm_dtype=jnp.bfloat16)
    err_same = float(jnp.max(jnp.abs(y - y_ref_bf)))
    assert jnp.allclose(y, y_ref_bf, atol=2e-3, rtol=2e-3), \
        f"kernel vs bf16-matched reference max abs err {err_same}"

    # Loose sanity check vs. the pure-f32 PyTorch-semantics reference (bf16 accuracy budget).
    y_ref_f32 = ref_block(x, (T, H, W), params, NHEADS, mm_dtype=None)
    err_f32 = float(jnp.max(jnp.abs(y - y_ref_f32)))
    assert err_f32 < 0.25, f"kernel vs f32 reference max abs err {err_f32}"

    print("KERNEL_OK")
</pallas_src>

<mosaic_0001>
module attributes {stable_mosaic.version = 11 : i64} {
  func.func @fused_block_kernel(%arg0: i32, %arg1: memref<2x16x128xf32, #tpu.memory_space<vmem>>, %arg2: memref<128x384xbf16, #tpu.memory_space<vmem>>, %arg3: memref<1x384xf32, #tpu.memory_space<vmem>>, %arg4: memref<128x128xbf16, #tpu.memory_space<vmem>>, %arg5: memref<1x128xf32, #tpu.memory_space<vmem>>, %arg6: memref<1x128xf32, #tpu.memory_space<vmem>>, %arg7: memref<1x128xf32, #tpu.memory_space<vmem>>, %arg8: memref<128x512xbf16, #tpu.memory_space<vmem>>, %arg9: memref<1x512xf32, #tpu.memory_space<vmem>>, %arg10: memref<512x128xbf16, #tpu.memory_space<vmem>>, %arg11: memref<1x128xf32, #tpu.memory_space<vmem>>, %arg12: memref<1x128xf32, #tpu.memory_space<vmem>>, %arg13: memref<1x128xf32, #tpu.memory_space<vmem>>, %arg14: memref<2x16x128xf32, #tpu.memory_space<vmem>>) attributes {dimension_semantics = [#tpu.dimension_semantics<parallel>], iteration_bounds = array<i64: 2>, scalar_prefetch = 0 : i64, scratch_operands = 0 : i64, tpu.core_type = #tpu.core_type<tc>, window_params = [{transform_indices = @transform_0, window_bounds = array<i64: 2, 16, 128>}, {pipeline_mode = #tpu.pipeline_mode<synchronous>, transform_indices = @transform_1, window_bounds = array<i64: 128, 384>}, {pipeline_mode = #tpu.pipeline_mode<synchronous>, transform_indices = @transform_2, window_bounds = array<i64: 1, 384>}, {pipeline_mode = #tpu.pipeline_mode<synchronous>, transform_indices = @transform_3, window_bounds = array<i64: 128, 128>}, {pipeline_mode = #tpu.pipeline_mode<synchronous>, transform_indices = @transform_4, window_bounds = array<i64: 1, 128>}, {pipeline_mode = #tpu.pipeline_mode<synchronous>, transform_indices = @transform_5, window_bounds = array<i64: 1, 128>}, {pipeline_mode = #tpu.pipeline_mode<synchronous>, transform_indices = @transform_6, window_bounds = array<i64: 1, 128>}, {pipeline_mode = #tpu.pipeline_mode<synchronous>, transform_indices = @transform_7, window_bounds = array<i64: 128, 512>}, {pipeline_mode = #tpu.pipeline_mode<synchronous>, transform_indices = @transform_8, window_bounds = array<i64: 1, 512>}, {pipeline_mode = #tpu.pipeline_mode<synchronous>, transform_indices = @transform_9, window_bounds = array<i64: 512, 128>}, {pipeline_mode = #tpu.pipeline_mode<synchronous>, transform_indices = @transform_10, window_bounds = array<i64: 1, 128>}, {pipeline_mode = #tpu.pipeline_mode<synchronous>, transform_indices = @transform_11, window_bounds = array<i64: 1, 128>}, {pipeline_mode = #tpu.pipeline_mode<synchronous>, transform_indices = @transform_12, window_bounds = array<i64: 1, 128>}, {transform_indices = @transform_13, window_bounds = array<i64: 2, 16, 128>}]} {
    %c0 = arith.constant 0 : index
    %c0_0 = arith.constant 0 : index
    %c0_1 = arith.constant 0 : index
    %0 = vector.load %arg1[%c0, %c0_0, %c0_1] : memref<2x16x128xf32, #tpu.memory_space<vmem>>, vector<2x16x128xf32>
    %1 = vector.shape_cast %0 : vector<2x16x128xf32> to vector<32x128xf32>
    %c0_2 = arith.constant 0 : index
    %c0_3 = arith.constant 0 : index
    %2 = vector.load %arg6[%c0_2, %c0_3] : memref<1x128xf32, #tpu.memory_space<vmem>>, vector<1x128xf32>
    %c0_4 = arith.constant 0 : index
    %c0_5 = arith.constant 0 : index
    %3 = vector.load %arg7[%c0_4, %c0_5] : memref<1x128xf32, #tpu.memory_space<vmem>>, vector<1x128xf32>
    %cst = arith.constant dense<0.000000e+00> : vector<32xf32>
    %4 = vector.multi_reduction <add>, %1, %cst [1] : vector<32x128xf32> to vector<32xf32>
    %5 = vector.shape_cast %4 : vector<32xf32> to vector<32x1xf32>
    %cst_6 = arith.constant 1.280000e+02 : f32
    %6 = vector.broadcast %cst_6 : f32 to vector<32x1xf32>
    %7 = arith.divf %5, %6 : vector<32x1xf32>
    %8 = vector.broadcast %7 : vector<32x1xf32> to vector<32x128xf32>
    %9 = arith.subf %1, %8 : vector<32x128xf32>
    %10 = arith.mulf %9, %9 : vector<32x128xf32>
    %cst_7 = arith.constant dense<0.000000e+00> : vector<32xf32>
    %11 = vector.multi_reduction <add>, %10, %cst_7 [1] : vector<32x128xf32> to vector<32xf32>
    %12 = vector.shape_cast %11 : vector<32xf32> to vector<32x1xf32>
    %cst_8 = arith.constant 1.280000e+02 : f32
    %13 = vector.broadcast %cst_8 : f32 to vector<32x1xf32>
    %14 = arith.divf %12, %13 : vector<32x1xf32>
    %cst_9 = arith.constant 9.99999974E-6 : f32
    %15 = vector.broadcast %cst_9 : f32 to vector<32x1xf32>
    %16 = arith.addf %14, %15 : vector<32x1xf32>
    %17 = math.rsqrt %16 : vector<32x1xf32>
    %18 = vector.broadcast %17 : vector<32x1xf32> to vector<32x128xf32>
    %19 = arith.mulf %9, %18 : vector<32x128xf32>
    %20 = vector.broadcast %2 : vector<1x128xf32> to vector<32x128xf32>
    %21 = arith.mulf %19, %20 : vector<32x128xf32>
    %22 = vector.broadcast %3 : vector<1x128xf32> to vector<32x128xf32>
    %23 = arith.addf %21, %22 : vector<32x128xf32>
    %24 = arith.truncf %23 : vector<32x128xf32> to vector<32x128xbf16>
    %c0_10 = arith.constant 0 : index
    %c0_11 = arith.constant 0 : index
    %25 = vector.load %arg2[%c0_10, %c0_11] : memref<128x384xbf16, #tpu.memory_space<vmem>>, vector<128x384xbf16>
    %cst_12 = arith.constant dense<0.000000e+00> : vector<32x384xf32>
    %26 = tpu.matmul %24, %25, %cst_12 {dimension_numbers = #tpu.dot_dimension_numbers<[1], [0], [0], [1], [0, 0, 1, 1], [], []>} : vector<32x128xbf16>, vector<128x384xbf16>, vector<32x384xf32> -> vector<32x384xf32>
    %c0_13 = arith.constant 0 : index
    %c0_14 = arith.constant 0 : index
    %27 = vector.load %arg3[%c0_13, %c0_14] : memref<1x384xf32, #tpu.memory_space<vmem>>, vector<1x384xf32>
    %28 = vector.broadcast %27 : vector<1x384xf32> to vector<32x384xf32>
    %29 = arith.addf %26, %28 : vector<32x384xf32>
    %30 = vector.extract_strided_slice %29 {offsets = [0, 0], sizes = [32, 128], strides = [1, 1]} : vector<32x384xf32> to vector<32x128xf32>
    %cst_15 = arith.constant 0.176776692 : f32
    %31 = vector.broadcast %cst_15 : f32 to vector<32x128xf32>
    %32 = arith.mulf %30, %31 : vector<32x128xf32>
    %33 = vector.extract_strided_slice %29 {offsets = [0, 128], sizes = [32, 128], strides = [1, 1]} : vector<32x384xf32> to vector<32x128xf32>
    %34 = vector.extract_strided_slice %29 {offsets = [0, 256], sizes = [32, 128], strides = [1, 1]} : vector<32x384xf32> to vector<32x128xf32>
    %35 = vector.shape_cast %32 : vector<32x128xf32> to vector<2x16x128xf32>
    %36 = arith.truncf %35 : vector<2x16x128xf32> to vector<2x16x128xbf16>
    %37 = vector.shape_cast %33 : vector<32x128xf32> to vector<2x16x128xf32>
    %38 = arith.truncf %37 : vector<2x16x128xf32> to vector<2x16x128xbf16>
    %39 = vector.shape_cast %34 : vector<32x128xf32> to vector<2x16x128xf32>
    %40 = arith.truncf %39 : vector<2x16x128xf32> to vector<2x16x128xbf16>
    %c0_16 = arith.constant 0 : index
    %c0_17 = arith.constant 0 : index
    %41 = vector.load %arg4[%c0_16, %c0_17] : memref<128x128xbf16, #tpu.memory_space<vmem>>, vector<128x128xbf16>
    %cst_18 = arith.constant 0.000000e+00 : f32
    %42 = vector.broadcast %cst_18 : f32 to vector<32x128xf32>
    %43 = vector.extract_strided_slice %36 {offsets = [0, 0, 0], sizes = [2, 16, 32], strides = [1, 1, 1]} : vector<2x16x128xbf16> to vector<2x16x32xbf16>
    %44 = vector.extract_strided_slice %38 {offsets = [0, 0, 0], sizes = [2, 16, 32], strides = [1, 1, 1]} : vector<2x16x128xbf16> to vector<2x16x32xbf16>
    "tpu.trace_start"() <{level = 10 : i32, message = "fqc,fkc->fqk"}> : () -> ()
    %cst_19 = arith.constant dense<0.000000e+00> : vector<2x16x16xf32>
    %45 = tpu.matmul %43, %44, %cst_19 {dimension_numbers = #tpu.dot_dimension_numbers<[2], [2], [1], [1], [0, 0, 0, 1, 1, 1], [0], [0]>} : vector<2x16x32xbf16>, vector<2x16x32xbf16>, vector<2x16x16xf32> -> vector<2x16x16xf32>
    "tpu.trace_stop"() : () -> ()
    %cst_20 = arith.constant dense<0xFF800000> : vector<2x16xf32>
    %46 = vector.multi_reduction <maximumf>, %45, %cst_20 [2] : vector<2x16x16xf32> to vector<2x16xf32>
    %47 = vector.shape_cast %46 : vector<2x16xf32> to vector<2x16x1xf32>
    %48 = vector.broadcast %47 : vector<2x16x1xf32> to vector<2x16x16xf32>
    %49 = arith.subf %45, %48 : vector<2x16x16xf32>
    %50 = math.exp %49 : vector<2x16x16xf32>
    %cst_21 = arith.constant dense<0.000000e+00> : vector<2x16xf32>
    %51 = vector.multi_reduction <add>, %50, %cst_21 [2] : vector<2x16x16xf32> to vector<2x16xf32>
    %52 = vector.shape_cast %51 : vector<2x16xf32> to vector<2x16x1xf32>
    %53 = vector.broadcast %52 : vector<2x16x1xf32> to vector<2x16x16xf32>
    %54 = arith.divf %50, %53 : vector<2x16x16xf32>
    %55 = arith.truncf %54 : vector<2x16x16xf32> to vector<2x16x16xbf16>
    %56 = vector.extract_strided_slice %40 {offsets = [0, 0, 0], sizes = [2, 16, 32], strides = [1, 1, 1]} : vector<2x16x128xbf16> to vector<2x16x32xbf16>
    "tpu.trace_start"() <{level = 10 : i32, message = "fqk,fkc->fqc"}> : () -> ()
    %cst_22 = arith.constant dense<0.000000e+00> : vector<2x16x32xf32>
    %57 = tpu.matmul %55, %56, %cst_22 {dimension_numbers = #tpu.dot_dimension_numbers<[2], [1], [1], [2], [0, 0, 0, 1, 1, 2], [0], [0]>} : vector<2x16x16xbf16>, vector<2x16x32xbf16>, vector<2x16x32xf32> -> vector<2x16x32xf32>
    "tpu.trace_stop"() : () -> ()
    %58 = vector.shape_cast %57 : vector<2x16x32xf32> to vector<32x32xf32>
    %59 = arith.truncf %58 : vector<32x32xf32> to vector<32x32xbf16>
    %60 = vector.extract_strided_slice %41 {offsets = [0, 0], sizes = [32, 128], strides = [1, 1]} : vector<128x128xbf16> to vector<32x128xbf16>
    %cst_23 = arith.constant dense<0.000000e+00> : vector<32x128xf32>
    %61 = tpu.matmul %59, %60, %cst_23 {dimension_numbers = #tpu.dot_dimension_numbers<[1], [0], [0], [1], [0, 0, 1, 1], [], []>} : vector<32x32xbf16>, vector<32x128xbf16>, vector<32x128xf32> -> vector<32x128xf32>
    %62 = arith.addf %42, %61 : vector<32x128xf32>
    %63 = vector.extract_strided_slice %36 {offsets = [0, 0, 32], sizes = [2, 16, 32], strides = [1, 1, 1]} : vector<2x16x128xbf16> to vector<2x16x32xbf16>
    %64 = vector.extract_strided_slice %38 {offsets = [0, 0, 32], sizes = [2, 16, 32], strides = [1, 1, 1]} : vector<2x16x128xbf16> to vector<2x16x32xbf16>
    "tpu.trace_start"() <{level = 10 : i32, message = "fqc,fkc->fqk"}> : () -> ()
    %cst_24 = arith.constant dense<0.000000e+00> : vector<2x16x16xf32>
    %65 = tpu.matmul %63, %64, %cst_24 {dimension_numbers = #tpu.dot_dimension_numbers<[2], [2], [1], [1], [0, 0, 0, 1, 1, 1], [0], [0]>} : vector<2x16x32xbf16>, vector<2x16x32xbf16>, vector<2x16x16xf32> -> vector<2x16x16xf32>
    "tpu.trace_stop"() : () -> ()
    %cst_25 = arith.constant dense<0xFF800000> : vector<2x16xf32>
    %66 = vector.multi_reduction <maximumf>, %65, %cst_25 [2] : vector<2x16x16xf32> to vector<2x16xf32>
    %67 = vector.shape_cast %66 : vector<2x16xf32> to vector<2x16x1xf32>
    %68 = vector.broadcast %67 : vector<2x16x1xf32> to vector<2x16x16xf32>
    %69 = arith.subf %65, %68 : vector<2x16x16xf32>
    %70 = math.exp %69 : vector<2x16x16xf32>
    %cst_26 = arith.constant dense<0.000000e+00> : vector<2x16xf32>
    %71 = vector.multi_reduction <add>, %70, %cst_26 [2] : vector<2x16x16xf32> to vector<2x16xf32>
    %72 = vector.shape_cast %71 : vector<2x16xf32> to vector<2x16x1xf32>
    %73 = vector.broadcast %72 : vector<2x16x1xf32> to vector<2x16x16xf32>
    %74 = arith.divf %70, %73 : vector<2x16x16xf32>
    %75 = arith.truncf %74 : vector<2x16x16xf32> to vector<2x16x16xbf16>
    %76 = vector.extract_strided_slice %40 {offsets = [0, 0, 32], sizes = [2, 16, 32], strides = [1, 1, 1]} : vector<2x16x128xbf16> to vector<2x16x32xbf16>
    "tpu.trace_start"() <{level = 10 : i32, message = "fqk,fkc->fqc"}> : () -> ()
    %cst_27 = arith.constant dense<0.000000e+00> : vector<2x16x32xf32>
    %77 = tpu.matmul %75, %76, %cst_27 {dimension_numbers = #tpu.dot_dimension_numbers<[2], [1], [1], [2], [0, 0, 0, 1, 1, 2], [0], [0]>} : vector<2x16x16xbf16>, vector<2x16x32xbf16>, vector<2x16x32xf32> -> vector<2x16x32xf32>
    "tpu.trace_stop"() : () -> ()
    %78 = vector.shape_cast %77 : vector<2x16x32xf32> to vector<32x32xf32>
    %79 = arith.truncf %78 : vector<32x32xf32> to vector<32x32xbf16>
    %80 = vector.extract_strided_slice %41 {offsets = [32, 0], sizes = [32, 128], strides = [1, 1]} : vector<128x128xbf16> to vector<32x128xbf16>
    %cst_28 = arith.constant dense<0.000000e+00> : vector<32x128xf32>
    %81 = tpu.matmul %79, %80, %cst_28 {dimension_numbers = #tpu.dot_dimension_numbers<[1], [0], [0], [1], [0, 0, 1, 1], [], []>} : vector<32x32xbf16>, vector<32x128xbf16>, vector<32x128xf32> -> vector<32x128xf32>
    %82 = arith.addf %62, %81 : vector<32x128xf32>
    %83 = vector.extract_strided_slice %36 {offsets = [0, 0, 64], sizes = [2, 16, 32], strides = [1, 1, 1]} : vector<2x16x128xbf16> to vector<2x16x32xbf16>
    %84 = vector.extract_strided_slice %38 {offsets = [0, 0, 64], sizes = [2, 16, 32], strides = [1, 1, 1]} : vector<2x16x128xbf16> to vector<2x16x32xbf16>
    "tpu.trace_start"() <{level = 10 : i32, message = "fqc,fkc->fqk"}> : () -> ()
    %cst_29 = arith.constant dense<0.000000e+00> : vector<2x16x16xf32>
    %85 = tpu.matmul %83, %84, %cst_29 {dimension_numbers = #tpu.dot_dimension_numbers<[2], [2], [1], [1], [0, 0, 0, 1, 1, 1], [0], [0]>} : vector<2x16x32xbf16>, vector<2x16x32xbf16>, vector<2x16x16xf32> -> vector<2x16x16xf32>
    "tpu.trace_stop"() : () -> ()
    %cst_30 = arith.constant dense<0xFF800000> : vector<2x16xf32>
    %86 = vector.multi_reduction <maximumf>, %85, %cst_30 [2] : vector<2x16x16xf32> to vector<2x16xf32>
    %87 = vector.shape_cast %86 : vector<2x16xf32> to vector<2x16x1xf32>
    %88 = vector.broadcast %87 : vector<2x16x1xf32> to vector<2x16x16xf32>
    %89 = arith.subf %85, %88 : vector<2x16x16xf32>
    %90 = math.exp %89 : vector<2x16x16xf32>
    %cst_31 = arith.constant dense<0.000000e+00> : vector<2x16xf32>
    %91 = vector.multi_reduction <add>, %90, %cst_31 [2] : vector<2x16x16xf32> to vector<2x16xf32>
    %92 = vector.shape_cast %91 : vector<2x16xf32> to vector<2x16x1xf32>
    %93 = vector.broadcast %92 : vector<2x16x1xf32> to vector<2x16x16xf32>
    %94 = arith.divf %90, %93 : vector<2x16x16xf32>
    %95 = arith.truncf %94 : vector<2x16x16xf32> to vector<2x16x16xbf16>
    %96 = vector.extract_strided_slice %40 {offsets = [0, 0, 64], sizes = [2, 16, 32], strides = [1, 1, 1]} : vector<2x16x128xbf16> to vector<2x16x32xbf16>
    "tpu.trace_start"() <{level = 10 : i32, message = "fqk,fkc->fqc"}> : () -> ()
    %cst_32 = arith.constant dense<0.000000e+00> : vector<2x16x32xf32>
    %97 = tpu.matmul %95, %96, %cst_32 {dimension_numbers = #tpu.dot_dimension_numbers<[2], [1], [1], [2], [0, 0, 0, 1, 1, 2], [0], [0]>} : vector<2x16x16xbf16>, vector<2x16x32xbf16>, vector<2x16x32xf32> -> vector<2x16x32xf32>
    "tpu.trace_stop"() : () -> ()
    %98 = vector.shape_cast %97 : vector<2x16x32xf32> to vector<32x32xf32>
    %99 = arith.truncf %98 : vector<32x32xf32> to vector<32x32xbf16>
    %100 = vector.extract_strided_slice %41 {offsets = [64, 0], sizes = [32, 128], strides = [1, 1]} : vector<128x128xbf16> to vector<32x128xbf16>
    %cst_33 = arith.constant dense<0.000000e+00> : vector<32x128xf32>
    %101 = tpu.matmul %99, %100, %cst_33 {dimension_numbers = #tpu.dot_dimension_numbers<[1], [0], [0], [1], [0, 0, 1, 1], [], []>} : vector<32x32xbf16>, vector<32x128xbf16>, vector<32x128xf32> -> vector<32x128xf32>
    %102 = arith.addf %82, %101 : vector<32x128xf32>
    %103 = vector.extract_strided_slice %36 {offsets = [0, 0, 96], sizes = [2, 16, 32], strides = [1, 1, 1]} : vector<2x16x128xbf16> to vector<2x16x32xbf16>
    %104 = vector.extract_strided_slice %38 {offsets = [0, 0, 96], sizes = [2, 16, 32], strides = [1, 1, 1]} : vector<2x16x128xbf16> to vector<2x16x32xbf16>
    "tpu.trace_start"() <{level = 10 : i32, message = "fqc,fkc->fqk"}> : () -> ()
    %cst_34 = arith.constant dense<0.000000e+00> : vector<2x16x16xf32>
    %105 = tpu.matmul %103, %104, %cst_34 {dimension_numbers = #tpu.dot_dimension_numbers<[2], [2], [1], [1], [0, 0, 0, 1, 1, 1], [0], [0]>} : vector<2x16x32xbf16>, vector<2x16x32xbf16>, vector<2x16x16xf32> -> vector<2x16x16xf32>
    "tpu.trace_stop"() : () -> ()
    %cst_35 = arith.constant dense<0xFF800000> : vector<2x16xf32>
    %106 = vector.multi_reduction <maximumf>, %105, %cst_35 [2] : vector<2x16x16xf32> to vector<2x16xf32>
    %107 = vector.shape_cast %106 : vector<2x16xf32> to vector<2x16x1xf32>
    %108 = vector.broadcast %107 : vector<2x16x1xf32> to vector<2x16x16xf32>
    %109 = arith.subf %105, %108 : vector<2x16x16xf32>
    %110 = math.exp %109 : vector<2x16x16xf32>
    %cst_36 = arith.constant dense<0.000000e+00> : vector<2x16xf32>
    %111 = vector.multi_reduction <add>, %110, %cst_36 [2] : vector<2x16x16xf32> to vector<2x16xf32>
    %112 = vector.shape_cast %111 : vector<2x16xf32> to vector<2x16x1xf32>
    %113 = vector.broadcast %112 : vector<2x16x1xf32> to vector<2x16x16xf32>
    %114 = arith.divf %110, %113 : vector<2x16x16xf32>
    %115 = arith.truncf %114 : vector<2x16x16xf32> to vector<2x16x16xbf16>
    %116 = vector.extract_strided_slice %40 {offsets = [0, 0, 96], sizes = [2, 16, 32], strides = [1, 1, 1]} : vector<2x16x128xbf16> to vector<2x16x32xbf16>
    "tpu.trace_start"() <{level = 10 : i32, message = "fqk,fkc->fqc"}> : () -> ()
    %cst_37 = arith.constant dense<0.000000e+00> : vector<2x16x32xf32>
    %117 = tpu.matmul %115, %116, %cst_37 {dimension_numbers = #tpu.dot_dimension_numbers<[2], [1], [1], [2], [0, 0, 0, 1, 1, 2], [0], [0]>} : vector<2x16x16xbf16>, vector<2x16x32xbf16>, vector<2x16x32xf32> -> vector<2x16x32xf32>
    "tpu.trace_stop"() : () -> ()
    %118 = vector.shape_cast %117 : vector<2x16x32xf32> to vector<32x32xf32>
    %119 = arith.truncf %118 : vector<32x32xf32> to vector<32x32xbf16>
    %120 = vector.extract_strided_slice %41 {offsets = [96, 0], sizes = [32, 128], strides = [1, 1]} : vector<128x128xbf16> to vector<32x128xbf16>
    %cst_38 = arith.constant dense<0.000000e+00> : vector<32x128xf32>
    %121 = tpu.matmul %119, %120, %cst_38 {dimension_numbers = #tpu.dot_dimension_numbers<[1], [0], [0], [1], [0, 0, 1, 1], [], []>} : vector<32x32xbf16>, vector<32x128xbf16>, vector<32x128xf32> -> vector<32x128xf32>
    %122 = arith.addf %102, %121 : vector<32x128xf32>
    %123 = arith.addf %1, %122 : vector<32x128xf32>
    %c0_39 = arith.constant 0 : index
    %c0_40 = arith.constant 0 : index
    %124 = vector.load %arg5[%c0_39, %c0_40] : memref<1x128xf32, #tpu.memory_space<vmem>>, vector<1x128xf32>
    %125 = vector.broadcast %124 : vector<1x128xf32> to vector<32x128xf32>
    %126 = arith.addf %123, %125 : vector<32x128xf32>
    %c0_41 = arith.constant 0 : index
    %c0_42 = arith.constant 0 : index
    %127 = vector.load %arg12[%c0_41, %c0_42] : memref<1x128xf32, #tpu.memory_space<vmem>>, vector<1x128xf32>
    %c0_43 = arith.constant 0 : index
    %c0_44 = arith.constant 0 : index
    %128 = vector.load %arg13[%c0_43, %c0_44] : memref<1x128xf32, #tpu.memory_space<vmem>>, vector<1x128xf32>
    %cst_45 = arith.constant dense<0.000000e+00> : vector<32xf32>
    %129 = vector.multi_reduction <add>, %126, %cst_45 [1] : vector<32x128xf32> to vector<32xf32>
    %130 = vector.shape_cast %129 : vector<32xf32> to vector<32x1xf32>
    %cst_46 = arith.constant 1.280000e+02 : f32
    %131 = vector.broadcast %cst_46 : f32 to vector<32x1xf32>
    %132 = arith.divf %130, %131 : vector<32x1xf32>
    %133 = vector.broadcast %132 : vector<32x1xf32> to vector<32x128xf32>
    %134 = arith.subf %126, %133 : vector<32x128xf32>
    %135 = arith.mulf %134, %134 : vector<32x128xf32>
    %cst_47 = arith.constant dense<0.000000e+00> : vector<32xf32>
    %136 = vector.multi_reduction <add>, %135, %cst_47 [1] : vector<32x128xf32> to vector<32xf32>
    %137 = vector.shape_cast %136 : vector<32xf32> to vector<32x1xf32>
    %cst_48 = arith.constant 1.280000e+02 : f32
    %138 = vector.broadcast %cst_48 : f32 to vector<32x1xf32>
    %139 = arith.divf %137, %138 : vector<32x1xf32>
    %cst_49 = arith.constant 9.99999974E-6 : f32
    %140 = vector.broadcast %cst_49 : f32 to vector<32x1xf32>
    %141 = arith.addf %139, %140 : vector<32x1xf32>
    %142 = math.rsqrt %141 : vector<32x1xf32>
    %143 = vector.broadcast %142 : vector<32x1xf32> to vector<32x128xf32>
    %144 = arith.mulf %134, %143 : vector<32x128xf32>
    %145 = vector.broadcast %127 : vector<1x128xf32> to vector<32x128xf32>
    %146 = arith.mulf %144, %145 : vector<32x128xf32>
    %147 = vector.broadcast %128 : vector<1x128xf32> to vector<32x128xf32>
    %148 = arith.addf %146, %147 : vector<32x128xf32>
    %149 = arith.truncf %148 : vector<32x128xf32> to vector<32x128xbf16>
    %c0_50 = arith.constant 0 : index
    %c0_51 = arith.constant 0 : index
    %150 = vector.load %arg8[%c0_50, %c0_51] : memref<128x512xbf16, #tpu.memory_space<vmem>>, vector<128x512xbf16>
    %cst_52 = arith.constant dense<0.000000e+00> : vector<32x512xf32>
    %151 = tpu.matmul %149, %150, %cst_52 {dimension_numbers = #tpu.dot_dimension_numbers<[1], [0], [0], [1], [0, 0, 1, 1], [], []>} : vector<32x128xbf16>, vector<128x512xbf16>, vector<32x512xf32> -> vector<32x512xf32>
    %c0_53 = arith.constant 0 : index
    %c0_54 = arith.constant 0 : index
    %152 = vector.load %arg9[%c0_53, %c0_54] : memref<1x512xf32, #tpu.memory_space<vmem>>, vector<1x512xf32>
    %153 = vector.broadcast %152 : vector<1x512xf32> to vector<32x512xf32>
    %154 = arith.addf %151, %153 : vector<32x512xf32>
    %cst_55 = arith.constant 5.000000e-01 : f32
    %155 = vector.broadcast %cst_55 : f32 to vector<32x512xf32>
    %156 = arith.mulf %155, %154 : vector<32x512xf32>
    %cst_56 = arith.constant 8.510000e-01 : f32
    %157 = vector.broadcast %cst_56 : f32 to vector<32x512xf32>
    %158 = arith.mulf %157, %154 : vector<32x512xf32>
    %159 = math.tanh %158 : vector<32x512xf32>
    %cst_57 = arith.constant 1.000000e+00 : f32
    %160 = vector.broadcast %cst_57 : f32 to vector<32x512xf32>
    %161 = arith.addf %160, %159 : vector<32x512xf32>
    %162 = arith.mulf %156, %161 : vector<32x512xf32>
    %163 = arith.truncf %162 : vector<32x512xf32> to vector<32x512xbf16>
    %c0_58 = arith.constant 0 : index
    %c0_59 = arith.constant 0 : index
    %164 = vector.load %arg10[%c0_58, %c0_59] : memref<512x128xbf16, #tpu.memory_space<vmem>>, vector<512x128xbf16>
    %cst_60 = arith.constant dense<0.000000e+00> : vector<32x128xf32>
    %165 = tpu.matmul %163, %164, %cst_60 {dimension_numbers = #tpu.dot_dimension_numbers<[1], [0], [0], [1], [0, 0, 1, 1], [], []>} : vector<32x512xbf16>, vector<512x128xbf16>, vector<32x128xf32> -> vector<32x128xf32>
    %c0_61 = arith.constant 0 : index
    %c0_62 = arith.constant 0 : index
    %166 = vector.load %arg11[%c0_61, %c0_62] : memref<1x128xf32, #tpu.memory_space<vmem>>, vector<1x128xf32>
    %167 = vector.broadcast %166 : vector<1x128xf32> to vector<32x128xf32>
    %168 = arith.addf %165, %167 : vector<32x128xf32>
    %169 = arith.addf %126, %168 : vector<32x128xf32>
    %170 = vector.shape_cast %169 : vector<32x128xf32> to vector<2x16x128xf32>
    %c0_63 = arith.constant 0 : index
    %c0_64 = arith.constant 0 : index
    %c0_65 = arith.constant 0 : index
    %171 = vector.load %arg14[%c0_63, %c0_64, %c0_65] : memref<2x16x128xf32, #tpu.memory_space<vmem>>, vector<2x16x128xf32>
    tpu.vector_store %arg14[%c0_63, %c0_64, %c0_65], %170 {strides = array<i32>} : memref<2x16x128xf32, #tpu.memory_space<vmem>>, vector<2x16x128xf32>,
    return
  }
  func.func @transform_0(%arg0: i32) -> (i32, i32, i32) {
    %c0_i32 = arith.constant 0 : i32
    %c0_i32_0 = arith.constant 0 : i32
    %c0_i32_1 = arith.constant 0 : i32
    return %arg0, %c0_i32, %c0_i32_0 : i32, i32, i32
  }
  func.func @transform_1(%arg0: i32) -> (i32, i32) {
    %c0_i32 = arith.constant 0 : i32
    %c0_i32_0 = arith.constant 0 : i32
    %c0_i32_1 = arith.constant 0 : i32
    return %c0_i32, %c0_i32_0 : i32, i32
  }
  func.func @transform_2(%arg0: i32) -> (i32, i32) {
    %c0_i32 = arith.constant 0 : i32
    %c0_i32_0 = arith.constant 0 : i32
    %c0_i32_1 = arith.constant 0 : i32
    return %c0_i32, %c0_i32_0 : i32, i32
  }
  func.func @transform_3(%arg0: i32) -> (i32, i32) {
    %c0_i32 = arith.constant 0 : i32
    %c0_i32_0 = arith.constant 0 : i32
    %c0_i32_1 = arith.constant 0 : i32
    return %c0_i32, %c0_i32_0 : i32, i32
  }
  func.func @transform_4(%arg0: i32) -> (i32, i32) {
    %c0_i32 = arith.constant 0 : i32
    %c0_i32_0 = arith.constant 0 : i32
    %c0_i32_1 = arith.constant 0 : i32
    return %c0_i32, %c0_i32_0 : i32, i32
  }
  func.func @transform_5(%arg0: i32) -> (i32, i32) {
    %c0_i32 = arith.constant 0 : i32
    %c0_i32_0 = arith.constant 0 : i32
    %c0_i32_1 = arith.constant 0 : i32
    return %c0_i32, %c0_i32_0 : i32, i32
  }
  func.func @transform_6(%arg0: i32) -> (i32, i32) {
    %c0_i32 = arith.constant 0 : i32
    %c0_i32_0 = arith.constant 0 : i32
    %c0_i32_1 = arith.constant 0 : i32
    return %c0_i32, %c0_i32_0 : i32, i32
  }
  func.func @transform_7(%arg0: i32) -> (i32, i32) {
    %c0_i32 = arith.constant 0 : i32
    %c0_i32_0 = arith.constant 0 : i32
    %c0_i32_1 = arith.constant 0 : i32
    return %c0_i32, %c0_i32_0 : i32, i32
  }
  func.func @transform_8(%arg0: i32) -> (i32, i32) {
    %c0_i32 = arith.constant 0 : i32
    %c0_i32_0 = arith.constant 0 : i32
    %c0_i32_1 = arith.constant 0 : i32
    return %c0_i32, %c0_i32_0 : i32, i32
  }
  func.func @transform_9(%arg0: i32) -> (i32, i32) {
    %c0_i32 = arith.constant 0 : i32
    %c0_i32_0 = arith.constant 0 : i32
    %c0_i32_1 = arith.constant 0 : i32
    return %c0_i32, %c0_i32_0 : i32, i32
  }
  func.func @transform_10(%arg0: i32) -> (i32, i32) {
    %c0_i32 = arith.constant 0 : i32
    %c0_i32_0 = arith.constant 0 : i32
    %c0_i32_1 = arith.constant 0 : i32
    return %c0_i32, %c0_i32_0 : i32, i32
  }
  func.func @transform_11(%arg0: i32) -> (i32, i32) {
    %c0_i32 = arith.constant 0 : i32
    %c0_i32_0 = arith.constant 0 : i32
    %c0_i32_1 = arith.constant 0 : i32
    return %c0_i32, %c0_i32_0 : i32, i32
  }
  func.func @transform_12(%arg0: i32) -> (i32, i32) {
    %c0_i32 = arith.constant 0 : i32
    %c0_i32_0 = arith.constant 0 : i32
    %c0_i32_1 = arith.constant 0 : i32
    return %c0_i32, %c0_i32_0 : i32, i32
  }
  func.func @transform_13(%arg0: i32) -> (i32, i32, i32) {
    %c0_i32 = arith.constant 0 : i32
    %c0_i32_0 = arith.constant 0 : i32
    %c0_i32_1 = arith.constant 0 : i32
    return %arg0, %c0_i32, %c0_i32_0 : i32, i32, i32
  }
}

</mosaic_0001>

<bundles_post_ra>
// kernel: tpu_custom_call.1
= control target key start
LH: loop header
LB: loop body
LE: loop exit
PB: predicated region body
PF: predicated region fallthrough
CT: control target
= control target key end

     0   :  { %s4547_s0 = inlined_call_operand.hbm [shape: f32[4,16,128], index: 0, kind: input, shape index: {}]   ;;  %s4548_s1 = inlined_call_operand.hbm [shape: bf16[128,384], index: 1, kind: input, shape index: {}]   ;;  %s4549_s2 = inlined_call_operand.hbm [shape: f32[1,384], index: 2, kind: input, shape index: {}]   ;;  %s4550_s3 = inlined_call_operand.hbm [shape: bf16[128,128], index: 3, kind: input, shape index: {}]   ;;  %s4551_s4 = inlined_call_operand.vmem [shape: f32[1,128], index: 4, kind: input, shape index: {}]   ;;  %s4552_s5 = inlined_call_operand.vmem [shape: f32[1,128], index: 5, kind: input, shape index: {}]   ;;  %s4553_s6 = inlined_call_operand.vmem [shape: f32[1,128], index: 6, kind: input, shape index: {}]   ;;  %s4554_s7 = inlined_call_operand.hbm [shape: bf16[128,512], index: 7, kind: input, shape index: {}]   ;;  %s4555_s8 = inlined_call_operand.vmem [shape: f32[1,512], index: 8, kind: input, shape index: {}]   ;;  %s4556_s9 = inlined_call_operand.hbm [shape: bf16[512,128], index: 9, kind: input, shape index: {}]   ;;  %s4557_s10 = inlined_call_operand.vmem [shape: f32[1,128], index: 10, kind: input, shape index: {}]   ;;  %s4558_s11 = inlined_call_operand.vmem [shape: f32[1,128], index: 11, kind: input, shape index: {}]   ;;  %s4559_s12 = inlined_call_operand.vmem [shape: f32[1,128], index: 12, kind: input, shape index: {}]   ;;  %s4560_s13 = inlined_call_operand.hbm [shape: f32[4,16,128], index: 13, kind: output, shape index: {}]  }
   0x1   :  { %4562 = sst [smem:[#allocation19_spill]] %s4548_s1 }
   0x2   :  { %4563 = sst [smem:[#allocation20_spill]] %s4549_s2 }
   0x3   :  { %4564 = sst [smem:[#allocation21_spill]] %s4550_s3 }
   0x4   :  { %4565 = sst [smem:[#allocation22_spill]] %s4554_s7 }
   0x5   :  { %4566 = sst [smem:[#allocation23_spill]] %s4555_s8 }
   0x6   :  { %4567 = sst [smem:[#allocation24_spill]] %s4556_s9 }
   0x7   :  { %4568 = sst [smem:[#allocation25_spill]] %s4557_s10 }
   0x8   :  { %4569 = sst [smem:[#allocation26_spill]] %s4560_s13 }
   0x9   :  { %18 = vsyncpa [#allocation3], 0 }
   0xa   :  { %20 = vsyncpa [#allocation3 + $0x1], 0 }
   0xb   :  { %21 = vsyncpa [#allocation6], 0 }
   0xc   :  { %22 = vsyncpa [#allocation9], 0 }
   0xd   :  { %23 = vsyncpa [#allocation12], 0 }
   0xe   :  { %24 = vsyncpa [#allocation4], 0 }
   0xf   :  { %26 = vsyncpa [#allocation4 + $0x1], 0  ;;  %s3964_s25 = smov 0   ;;  %s3966_s26 = smov 0  }
  0x10   :  { %s3968_s27 = smov 0   ;;  %s3970_s28 = smov 0  }
  0x11 LB: > { %s4570_s1 = sld [smem:[#allocation19_spill]]  ;;  %s3988_s15 = sadd.s32 4294967295, %s3873_s28   ;;  %s3873_s28 = sphi %s3970_s28, %s4595_s28   ;;  %s3869_s27 = sphi %s3968_s27, %s4594_s27   ;;  %s3865_s26 = sphi %s3966_s26, %s4593_s26   ;;  %s3861_s25 = sphi %s3964_s25, %s4592_s25  }
  0x12   : > { %p2847_p0 = scmp.ge.s32.totalorder %s3873_s28, 1  ;;  %p53_p1 = scmp.eq.s32.totalorder %s3988_s15, 0 }
  0x13   : > { %p341_p2 = scmp.lt.s32.totalorder %s3873_s28, 3  ;;  %s3875_s17 = smov [#allocation5]  }
  0x14   : > { %s354_s18 = sshll.u32 %s3875_s17, 4  ;;  %s4572_s3 = sld [smem:[#allocation21_spill]]  ;;  %s355_s18 = int_to_ptr.vmem [resolvable:$true] %s354_s18 }
  0x15   : > { %p3993_p3 = pnand %p2847_p0, %p341_p2  ;;  %s3876_s23 = smov [#allocation8]  }
  0x16   : > { %s380_s24 = sshll.u32 %s3876_s23, 4  ;;  %s3877_s29 = smov 192   ;;  %s381_s24 = int_to_ptr.vmem [resolvable:$true] %s380_s24 }
  0x17   : > { %s352_s14 = sshll.u32 %s4570_s1, 4  ;;  %p3404_p4 = pneg %p3993_p3  ;;  %s353_s14 = int_to_ptr.hbm [resolvable:$true] %s352_s14 }
  0x18   : > { %s3878_s30 = smov 12   ;;  %s3879_s17 = smov 64  }
  0x19   : > { %p4005_p6 = pnand %p3404_p4, %p53_p1  ;;  %s3880_s19 = smov 4  }
  0x1a   : > { %s378_s21 = sshll.u32 %s4572_s3, 4  ;;  %s4574_s2 = sld [smem:[#allocation20_spill]]  ;;  %s379_s21 = int_to_ptr.hbm [resolvable:$true] %s378_s21 }
  0x1b   : > { %3407 = dma.hbm_to_vmem [thread:$0]  (!%p4005_p6), %s353_s14, 3072, %s355_s18, [#allocation6], %s3877_s29, %s3877_s29, %s3878_s30  }
  0x1c   : > { %3413 = dma.hbm_to_vmem [thread:$0]  (!%p4005_p6), %s379_s21, 1024, %s381_s24, [#allocation9], %s3879_s17, %s3879_s17, %s3880_s19  }
  0x1d   : > { %s3881_s13 = smov [#allocation7]   ;;  %s4575_s7 = sld [smem:[#allocation22_spill]] }
  0x1e   : > { %s369_s10 = sshll.u32 %s3881_s13, 4  ;;  %s3882_s18 = smov [#allocation10]   ;;  %s370_s10 = int_to_ptr.vmem [resolvable:$true] %s369_s10 }
  0x1f   : > { %s403_s1 = sshll.u32 %s3882_s18, 4  ;;  %s3883_s13 = smov 256   ;;  %s404_s1 = int_to_ptr.vmem [resolvable:$true] %s403_s1 }
  0x20   : > { %s367_s3 = sshll.u32 %s4574_s2, 4  ;;  %s3884_s21 = smov 16   ;;  %s368_s3 = int_to_ptr.hbm [resolvable:$true] %s367_s3 }
  0x21   : > { %3410 = dma.hbm_to_vmem [thread:$0]  (!%p4005_p6), %s368_s3, 48, %s370_s10, [#allocation6]  }
  0x22   : > { %s4576_s9 = sld [smem:[#allocation24_spill]]  ;;  %s3885_s10 = smov [#allocation11]  }
  0x23   : > { %s401_s14 = sshll.u32 %s4575_s7, 4  ;;  %s420_s29 = sshll.u32 %s3885_s10, 4  ;;  %s402_s14 = int_to_ptr.hbm [resolvable:$true] %s401_s14  ;;  %s421_s29 = int_to_ptr.vmem [resolvable:$true] %s420_s29 }
  0x24   : > { %3416 = dma.hbm_to_vmem [thread:$0]  (!%p4005_p6), %s402_s14, 4096, %s404_s1, [#allocation9], %s3883_s13, %s3883_s13, %s3884_s21  }
  0x25   : > { %s2846_s30 = sadd.s32 4294967294, %s3873_s28   ;;  %s4030_s20 = sadd.s32 1, %s3873_s28  }
  0x26   : > { %s39_s23 = sadd.s32 1, %s3869_s27  ;;  %s36_s14 = ssub.s32 %s3873_s28, %s4030_s20 }
  0x27   : > { %p46_p7 = scmp.ne.s32.totalorder %s3869_s27, %s3865_s26  ;;  %p37_p8 = scmp.eq.s32.totalorder %s36_s14, 0 }
  0x28   : > { %s418_s3 = sshll.u32 %s4576_s9, 4  ;;  %p47_p9 = scmp.eq.s32.totalorder %s3873_s28, 0  ;;  %s419_s3 = int_to_ptr.hbm [resolvable:$true] %s418_s3 }
  0x29   : > { %3419 = dma.hbm_to_vmem [thread:$0]  (!%p4005_p6), %s419_s3, 4096, %s421_s29, [#allocation12], %s3879_s17, %s3879_s17, %s3880_s19  }
  0x2a   : > { %p52_p10 = scmp.ne.s32.totalorder %s3865_s26, %s3861_s25  ;;  %p328_p11 = scmp.eq.s32.totalorder %s3988_s15, 1 }
  0x2b   : > { %s4042_s18 = scalar_select %p37_p8, %s3869_s27, %s39_s23  }
  0x2c   : > { %p4044_p12 = por %p47_p9, %p46_p7  ;;  %p4050_p13 = por %p53_p1, %p52_p10 }
  0x2d   : > { %p4054_p0 = por %p328_p11, %p46_p7  ;;  %p334_p2 = scmp.eq.s32.totalorder %s2846_s30, 1 }
  0x2e   : > { %p3433_p4 = scmp.lt.s32.totalorder %s3873_s28, 2  ;;  %s443_s19 = sand.u32 1, %s3869_s27  }
  0x2f   : > { %p4060_p6 = por %p334_p2, %p52_p10  ;;  %s2854_s21 = sshll.u32 %s443_s19, 5 }
  0x30   : > { %s3281_s8 = sshll.u32 %s3873_s28, 5  ;;  %s447_s23 = scalar_lea.vmem [#allocation2], %s2854_s21 }
  0x31   : > { %s453_s10 = scalar_lea.hbm %s4547_s0, %s3281_s8  ;;  %s456_s14 = sshll.u32 %s447_s23, 4  ;;  %s457_s14 = int_to_ptr.vmem [resolvable:$true] %s456_s14 }
  0x32   : > { %s454_s29 = sshll.u32 %s453_s10, 4  ;;  %p4070_p7 = pnand %p3433_p4, %p4044_p12  ;;  %s455_s29 = int_to_ptr.hbm [resolvable:$true] %s454_s29 }
  0x33   : > { %s444_s2 = scalar_lea.sflag [#allocation3], %s443_s19  ;;  %s3765_s7 = sshra.s32 %s455_s29, 4  ;;  %s3766_s7 = int_to_ptr.hbm [resolvable:$true] %s3765_s7 }
  0x34   : > { %s3767_s9 = scalar_lea.hbm %s3766_s7, 32  ;;  %p3769_p9 = pneg %p4070_p7 }
  0x35   : > { %p3768_p8 = scmp.ne.s32.totalorder %s3766_s7, %s3767_s9  ;;  %s3772_s24 = scalar_lea.hbm %s4547_s0, 64 }
  0x36   : > { %p3773_p12 = scmp.lt.s32.totalorder %s3766_s7, %s4547_s0  ;;  %p3774_p2 = scmp.lt.s32.totalorder %s3772_s24, %s3767_s9 }
  0x37   : > { %p3770_p10 = pnand %p3769_p9, %p3768_p8 }
  0x38   : > { %p3775_p4 = por %p3774_p2, %p3773_p12 }
  0x39   : > { %p3771_p11 = pneg %p3770_p10 }
  0x3b   : > { %p3776_p5 = pnand %p3775_p4, %p3771_p11 }
  0x3d   : > { %3779 = shalt.err (!%p3776_p5)
}
  0x3e   : > { %s3886_s19 = smov 128   ;;  %s3887_s10 = smov 8  }
  0x3f   : > { %3423 = dma.hbm_to_vmem [thread:$0]  (!%p4070_p7), %s455_s29, 512, %s457_s14, %s444_s2, %s3886_s19, %s3886_s19, %s3887_s10  }
  0x40   : > { %468 = sbr.rel (%p3993_p3) target bundleno = 2856 (0xb28), region = 72  ;;  %s4087_s23 = sand.u32 (!%p3993_p3), 1, %s3865_s26  }
  0x41   : > { %s2859_s7 = sshll.u32 (!%p3993_p3), %s4087_s23, 5  ;;  %s471_s9 = scalar_lea.sflag (!%p3993_p3), [#allocation3], %s4087_s23 }
  0x42   : > { %s4093_s8 = scalar_lea.vmem (!%p3993_p3), [#allocation2], %s2859_s7 }
  0x45   : > { %3840 = dma.done.wait (%p4050_p13), %s471_s9, 512  }
  0x46   : > { %3842 = vsyncadd (%p4050_p13), %s471_s9, 4294966784 }
  0x47   : > { %3844 = dma.done.wait (%p53_p1), [#allocation6], 3120  }
  0x48   : > { %3846 = vsyncadd (%p53_p1), [#allocation6], 4294964176 }
  0x49   : > { %3848 = dma.done.wait (%p53_p1), [#allocation9], 5120  }
  0x4a   : > { %3850 = vsyncadd (%p53_p1), [#allocation9], 4294962176 }
  0x4b   : > { %3852 = dma.done.wait (%p53_p1), [#allocation12], 4096  }
  0x4c   : > { %3854 = vsyncadd (%p53_p1), [#allocation12], 4294963200  ;;  %v546_v0 = vld [vmem:[%s4093_s8] sm:$0xff]  ;;  %v548_v1 = vld [vmem:[%s4093_s8 + $0x10] sm:$0xff]  ;;  %v3888_v4 = vmov 128.0   ;;  %vm922_vm13 = vcmask 261120  }
  0x4d   : > { %552 = vadd.xlane.f32.xlu0 %v546_v0  ;;  %556 = vadd.xlane.f32.xlu2 %v548_v1  ;;  %v547_v2 = vld [vmem:[%s4093_s8 + $0x8] sm:$0xff]  ;;  %v549_v3 = vld [vmem:[%s4093_s8 + $0x18] sm:$0xff]  ;;  %3497 = vrcp.f32 %v3888_v4  ;;  %v3304_v28 = vld [vmem:[#allocation5 + $0xb0] sm:$0xf0]  ;;  %s3889_s14 = smov 96   ;;  %s3890_s30 = smov 64  }
  0x4e   : > { %v2952_v27 = vld [vmem:[#allocation5 + $0xa8] sm:$0xf]  ;;  %v3303_v29 = vld [vmem:[#allocation5 + $0xac] sm:$0xf]  ;;  %v2954_v31 = vld [vmem:[#allocation5 + $0xb4] sm:$0xf0] }
  0x4f   : > { %v2953_v30 = vor.u32 %v3304_v28, %v2952_v27  ;;  %v2960_v32 = vld [vmem:[#allocation5 + $0xb0] sm:$0xf]  ;;  %v3305_v33 = vld [vmem:[#allocation5 + $0xb8] sm:$0xf0]  ;;  %v2957_v34 = vor.u32 %v3303_v29, %v2954_v31  ;;  %v3300_v38 = vld [vmem:[#allocation5 + $0x94] sm:$0xf] }
  0x50   : > { %v2961_v35 = vor.u32 %v3305_v33, %v2960_v32  ;;  %v2940_v36 = vld [vmem:[#allocation5 + $0x90] sm:$0xf]  ;;  %v3301_v37 = vld [vmem:[#allocation5 + $0x98] sm:$0xf0]  ;;  %v2942_v40 = vld [vmem:[#allocation5 + $0x9c] sm:$0xf0] }
  0x51   : > { %823 = vmatpush.bf16.msra.mxu0 %v2953_v30  ;;  %842 = vmatpush.bf16.msra.mxu1 %v2957_v34  ;;  %v2941_v39 = vor.u32 %v3301_v37, %v2940_v36  ;;  %v2948_v41 = vld [vmem:[#allocation5 + $0x98] sm:$0xf]  ;;  %v3302_v42 = vld [vmem:[#allocation5 + $0xa0] sm:$0xf0]  ;;  %v2945_v43 = vor.u32 %v3300_v38, %v2942_v40  ;;  %v3297_v47 = vld [vmem:[#allocation5 + $0x7c] sm:$0xf] }
  0x52   : > { %861 = vmatpush.bf16.msra.mxu2 %v2961_v35  ;;  %v2949_v44 = vor.u32 %v3302_v42, %v2948_v41  ;;  %v2928_v45 = vld [vmem:[#allocation5 + $0x78] sm:$0xf]  ;;  %v3298_v46 = vld [vmem:[#allocation5 + $0x80] sm:$0xf0]  ;;  %v2930_v49 = vld [vmem:[#allocation5 + $0x84] sm:$0xf0] }
  0x53   : > { %v3498_v5 = vpop.eup %3497  ;;  %v2929_v48 = vor.u32 %v3298_v46, %v2928_v45  ;;  %v2936_v50 = vld [vmem:[#allocation5 + $0x80] sm:$0xf]  ;;  %v3299_v51 = vld [vmem:[#allocation5 + $0x88] sm:$0xf0]  ;;  %v2933_v52 = vor.u32 %v3297_v47, %v2930_v49  ;;  %v3294_v56 = vld [vmem:[#allocation5 + $0x64] sm:$0xf] }
  0x54   : > { %v561_v6 = vmul.f32 128.0, %v3498_v5  ;;  %vm565_vm0 = vweird.f32 %v3498_v5  ;;  %v2937_v53 = vor.u32 %v3299_v51, %v2936_v50  ;;  %v2916_v54 = vld [vmem:[#allocation5 + $0x60] sm:$0xf]  ;;  %v3295_v55 = vld [vmem:[#allocation5 + $0x68] sm:$0xf0]  ;;  %vm973_vm14 = vcmask 130048  }
  0x55   : > { %554 = vadd.xlane.f32.xlu0 %v547_v2  ;;  %558 = vadd.xlane.f32.xlu2 %v549_v3  ;;  %v2917_v57 = vor.u32 %v3295_v55, %v2916_v54  ;;  %v2918_v58 = vld [vmem:[#allocation5 + $0x6c] sm:$0xf0]  ;;  %v2924_v59 = vld [vmem:[#allocation5 + $0x68] sm:$0xf]  ;;  %v3296_v60 = vld [vmem:[#allocation5 + $0x70] sm:$0xf0] }
  0x56   : > { %v562_v7 = vsub.f32 1.0, %v561_v6  ;;  %824 = vmatpush.bf16.msra.mxu0 %v2941_v39  ;;  %843 = vmatpush.bf16.msra.mxu1 %v2945_v43  ;;  %v2921_v61 = vor.u32 %v3294_v56, %v2918_v58  ;;  %v2925_v62 = vor.u32 %v3296_v60, %v2924_v59  ;;  %v2904_v63 = vld [vmem:[#allocation5 + $0x48] sm:$0xf]  ;;  %v2912_v4 = vld [vmem:[#allocation5 + $0x50] sm:$0xf]  ;;  %s3891_s21 = smov 32  }
  0x57   : > { %862 = vmatpush.bf16.msra.mxu2 %v2949_v44  ;;  %v2888_v27 = vld [vmem:[#allocation5 + $0x20] sm:$0xf]  ;;  %v3287_v28 = vld [vmem:[#allocation5 + $0x28] sm:$0xf0]  ;;  %v3282_v37 = vld [vmem:[#allocation5 + $0x4] sm:$0xf] }
  0x58   : > { %v563_v8 = vmul.f32 %v3498_v5, %v562_v7  ;;  %v2889_v30 = vor.u32 %v3287_v28, %v2888_v27  ;;  %v2868_v35 = vld [vmem:[#allocation5] sm:$0xf]  ;;  %v3283_v36 = vld [vmem:[#allocation5 + $0x8] sm:$0xf0]  ;;  %v2870_v39 = vld [vmem:[#allocation5 + $0xc] sm:$0xf0] }
  0x59   : > { %v2869_v38 = vor.u32 %v3283_v36, %v2868_v35  ;;  %v2876_v40 = vld [vmem:[#allocation5 + $0x8] sm:$0xf]  ;;  %v3284_v41 = vld [vmem:[#allocation5 + $0x10] sm:$0xf0]  ;;  %v2873_v44 = vor.u32 %v3282_v37, %v2870_v39  ;;  %v687_v35 = vld [vmem:[#allocation7] sm:$0x7] }
  0x5a   : > { %v564_v9 = vadd.f32 %v3498_v5, %v563_v8  ;;  %825 = vmatpush.bf16.msra.mxu0 %v2929_v48  ;;  %844 = vmatpush.bf16.msra.mxu1 %v2933_v52  ;;  %v2892_v8 = vld [vmem:[#allocation5 + $0x30] sm:$0xf]  ;;  %v2877_v45 = vor.u32 %v3284_v41, %v2876_v40  ;;  %v689_v36 = vperm.slane %v687_v35, 0  ;;  %v690_v39 = vperm.slane %v687_v35, 1  ;;  %s4588_s16 = sld [smem:[#allocation23_spill]] }
  0x5b   : > { %863 = vmatpush.bf16.msra.mxu2 %v2937_v53  ;;  %s4590_s3 = sld [smem:[#allocation26_spill]] }
  0x5c   : > { %v4115_v10 = vsel %vm565_vm0, %v3498_v5, %v564_v9  ;;  %v3293_v5 = vld [vmem:[#allocation5 + $0x58] sm:$0xf0] }
  0x5d   : > { %v2913_v7 = vor.u32 %v3293_v5, %v2912_v4  ;;  %v3289_v9 = vld [vmem:[#allocation5 + $0x38] sm:$0xf0] }
  0x5e   : > { %826 = vmatpush.bf16.msra.mxu0 %v2917_v57  ;;  %845 = vmatpush.bf16.msra.mxu1 %v2921_v61 }
  0x5f   : > { %864 = vmatpush.bf16.msra.mxu2 %v2925_v62 }
  0x61   : > { %s3815_s22 = scalar_lea.hbm %s4590_s3, 64 }
  0x63   : > { %865 = vmatpush.bf16.msra.mxu2 %v2913_v7 }
  0xc0   : > { %v553_v11 = vpop.xlane.xlu0 %552  ;;  %v557_v12 = vpop.xlane.xlu2 %556 }
  0xc1   : > { %v567_v13 = vmul.f32 %v4115_v10, %v553_v11  ;;  %v569_v14 = vmul.f32 %v4115_v10, %v557_v12  ;;  %v3288_v11 = vld [vmem:[#allocation5 + $0x34] sm:$0xf]  ;;  %v2893_v12 = vor.u32 %v3289_v9, %v2892_v8 }
  0xc3   : > { %v4119_v15 = vsub.f32 %v546_v0, %v567_v13  ;;  %v4121_v16 = vsub.f32 %v548_v1, %v569_v14  ;;  %v3292_v0 = vld [vmem:[#allocation5 + $0x50] sm:$0xf0]  ;;  %v3291_v1 = vld [vmem:[#allocation5 + $0x4c] sm:$0xf]  ;;  %v2894_v13 = vld [vmem:[#allocation5 + $0x3c] sm:$0xf0] }
  0xc4   : > { %v2900_v14 = vld [vmem:[#allocation5 + $0x38] sm:$0xf] }
  0xc5   : > { %v575_v17 = vmul.f32 %v4119_v15, %v4119_v15  ;;  %v577_v18 = vmul.f32 %v4121_v16, %v4121_v16 }
  0xc7   : > { %579 = vadd.xlane.f32.xlu1 %v575_v17  ;;  %583 = vadd.xlane.f32.xlu0 %v577_v18  ;;  %v3290_v17 = vld [vmem:[#allocation5 + $0x40] sm:$0xf0]  ;;  %v2897_v18 = vor.u32 %v3288_v11, %v2894_v13 }
  0xc8   : > { %v555_v19 = vpop.xlane.xlu0 %554  ;;  %v559_v20 = vpop.xlane.xlu2 %558 }
  0xc9   : > { %v568_v21 = vmul.f32 %v4115_v10, %v555_v19  ;;  %v570_v23 = vmul.f32 %v4115_v10, %v559_v20  ;;  %v2901_v19 = vor.u32 %v3290_v17, %v2900_v14  ;;  %v2880_v20 = vld [vmem:[#allocation5 + $0x18] sm:$0xf] }
  0xcb   : > { %v4128_v22 = vsub.f32 %v547_v2, %v568_v21  ;;  %v4133_v25 = vsub.f32 %v549_v3, %v570_v23  ;;  %v2905_v2 = vor.u32 %v3292_v0, %v2904_v63  ;;  %v2906_v3 = vld [vmem:[#allocation5 + $0x54] sm:$0xf0]  ;;  %866 = vmatpush.bf16.msra.mxu2 %v2901_v19  ;;  %v3286_v21 = vld [vmem:[#allocation5 + $0x20] sm:$0xf0]  ;;  %v3285_v23 = vld [vmem:[#allocation5 + $0x1c] sm:$0xf] }
  0xcc   : > { %v2909_v6 = vor.u32 %v3291_v1, %v2906_v3 }
  0xcd   : > { %v576_v24 = vmul.f32 %v4128_v22, %v4128_v22  ;;  %v578_v26 = vmul.f32 %v4133_v25, %v4133_v25  ;;  %827 = vmatpush.bf16.msra.mxu0 %v2905_v2 }
  0xce   : > { %846 = vmatpush.bf16.msra.mxu1 %v2909_v6  ;;  %v3491_v6 = vld [vmem:[%s4552_s5] ss:$0 sm:$0xff] }
  0xcf   : > { %581 = vadd.xlane.f32.xlu1 %v576_v24  ;;  %v2881_v24 = vor.u32 %v3286_v21, %v2880_v20  ;;  %867 = vmatpush.bf16.msra.mxu2 %v2889_v30 }
  0xd1   : > { %828 = vmatpush.bf16.msra.mxu0 %v2893_v12 }
  0xd2   : > { %847 = vmatpush.bf16.msra.mxu1 %v2897_v18 }
  0xd3   : > { %868 = vmatpush.bf16.msra.mxu2 %v2877_v45 }
  0xd5   : > { %829 = vmatpush.bf16.msra.mxu0 %v2881_v24 }
  0xd7   : > { %585 = vadd.xlane.f32.xlu1 %v578_v26  ;;  %v2882_v26 = vld [vmem:[#allocation5 + $0x24] sm:$0xf0] }
  0xd8   : > { %v2885_v29 = vor.u32 %v3285_v23, %v2882_v26 }
  0xd9   : > { %830 = vmatpush.bf16.msra.mxu0 %v2869_v38 }
  0xda   : > { %848 = vmatpush.bf16.msra.mxu1 %v2885_v29 }
  0xde   : > { %849 = vmatpush.bf16.msra.mxu1 %v2873_v44 }
 0x13a   : > { %v580_v31 = vpop.xlane.xlu1 %579  ;;  %v584_v32 = vpop.xlane.xlu0 %583 }
 0x13b   : > { %v587_v33 = vmul.f32 %v580_v31, %v4115_v10  ;;  %v589_v34 = vmul.f32 %v584_v32, %v4115_v10 }
 0x13d   : > { %v591_v42 = vadd.f32 1e-05, %v587_v33  ;;  %v593_v43 = vadd.f32 1e-05, %v589_v34 }
 0x13f   : > { %3499 = vrsqrt.f32 %v591_v42  ;;  %vm601_vm2 = vweird.f32 %v591_v42  ;;  %vm621_vm7 = vweird.f32 %v593_v43 }
 0x140   : > { %3501 = vrsqrt.f32 %v593_v43 }
 0x142   : > { %v582_v46 = vpop.xlane.xlu1 %581 }
 0x143   : > { %v588_v47 = vmul.f32 %v582_v46, %v4115_v10 }
 0x145   : > { %v3500_v48 = vpop.eup %3499  ;;  %v592_v49 = vadd.f32 1e-05, %v588_v47 }
 0x146   : > { %v596_v50 = vmul.f32 %v3500_v48, %v591_v42  ;;  %v3502_v51 = vpop.eup %3501  ;;  %vm602_vm1 = vweird.f32 %v3500_v48 }
 0x147   : > { %3503 = vrsqrt.f32 %v592_v49  ;;  %v616_v55 = vmul.f32 %v3502_v51, %v593_v43  ;;  %vm603_vm3 = vmor %vm601_vm2, %vm602_vm1  ;;  %vm611_vm5 = vweird.f32 %v592_v49  ;;  %vm622_vm8 = vweird.f32 %v3502_v51 }
 0x148   : > { %v597_v52 = vmul.f32 %v3500_v48, %v596_v50  ;;  %vm623_vm11 = vmor %vm621_vm7, %vm622_vm8 }
 0x149   : > { %v617_v62 = vmul.f32 %v3502_v51, %v616_v55 }
 0x14a   : > { %v598_v53 = vmul.f32 0.5, %v597_v52  ;;  %v586_v54 = vpop.xlane.xlu1 %585 }
 0x14b   : > { %v590_v56 = vmul.f32 %v586_v54, %v4115_v10  ;;  %v618_v2 = vmul.f32 0.5, %v617_v62 }
 0x14c   : > { %v599_v57 = vsub.f32 1.5, %v598_v53 }
 0x14d   : > { %v3504_v58 = vpop.eup %3503  ;;  %v594_v59 = vadd.f32 1e-05, %v590_v56  ;;  %v619_v9 = vsub.f32 1.5, %v618_v2 }
 0x14e   : > { %v600_v60 = vmul.f32 %v3500_v48, %v599_v57  ;;  %v606_v61 = vmul.f32 %v3504_v58, %v592_v49  ;;  %vm612_vm4 = vweird.f32 %v3504_v58 }
 0x14f   : > { %3505 = vrsqrt.f32 %v594_v59  ;;  %vm613_vm6 = vmor %vm611_vm5, %vm612_vm4  ;;  %vm631_vm9 = vweird.f32 %v594_v59  ;;  %v620_v18 = vmul.f32 %v3502_v51, %v619_v9 }
 0x150   : > { %v607_v63 = vmul.f32 %v3504_v58, %v606_v61  ;;  %v604_v0 = vsel %vm603_vm3, %v3500_v48, %v600_v60  ;;  %v691_v60 = vperm.slane %v687_v35, 2 }
 0x151   : > { %v635_v5 = vmul.f32 %v604_v0, %v4119_v15  ;;  %v3492_v15 = vld [vmem:[%s4553_s6] ss:$0 sm:$0xff]  ;;  %v624_v26 = vsel %vm623_vm11, %v3502_v51, %v620_v18 }
 0x152   : > { %v608_v1 = vmul.f32 0.5, %v607_v63  ;;  %v637_v29 = vmul.f32 %v624_v26, %v4121_v16 }
 0x153   : > { %v642_v14 = vmul.f32 %v3491_v6, %v635_v5 }
 0x154   : > { %v609_v3 = vsub.f32 1.5, %v608_v1  ;;  %v644_v30 = vmul.f32 %v3491_v6, %v637_v29 }
 0x155   : > { %v3506_v4 = vpop.eup %3505  ;;  %v649_v21 = vadd.f32 %v3492_v15, %v642_v14 }
 0x156   : > { %v610_v7 = vmul.f32 %v3504_v58, %v609_v3  ;;  %v626_v8 = vmul.f32 %v3506_v4, %v594_v59  ;;  %vm632_vm10 = vweird.f32 %v3506_v4  ;;  %v651_v32 = vadd.f32 %v3492_v15, %v644_v30 }
 0x157   : > { %vm633_vm12 = vmor %vm631_vm9, %vm632_vm10 }
 0x158   : > { %v614_v11 = vsel %vm613_vm6, %v3504_v58, %v610_v7  ;;  %v627_v12 = vmul.f32 %v3506_v4, %v626_v8 }
 0x159   : > { %v636_v13 = vmul.f32 %v614_v11, %v4128_v22 }
 0x15a   : > { %v628_v17 = vmul.f32 0.5, %v627_v12 }
 0x15b   : > { %v643_v19 = vmul.f32 %v3491_v6, %v636_v13 }
 0x15c   : > { %v629_v20 = vsub.f32 1.5, %v628_v17 }
 0x15d   : > { %v650_v23 = vadd.f32 %v3492_v15, %v643_v19 }
 0x15e   : > { %v630_v24 = vmul.f32 %v3506_v4, %v629_v20 }
 0x15f   : > { %v653_v27 = vpack.c.bf16 %v650_v23, %v649_v21 }
 0x160   : > { %v634_v28 = vsel %vm633_vm12, %v3506_v4, %v630_v24 }
 0x161   : > { %v638_v22 = vmul.f32 %v634_v28, %v4133_v25  ;;  %831 = vmatmul.bf16.vlgmr.msra.gmra.mxu0 %v653_v27  ;;  %850 = vmatmul.bf16.vlgmr.msra.gmra.mxu1 %v653_v27 }
 0x162   : > { %869 = vmatmul.bf16.vlgmr.msra.gmra.mxu2 %v653_v27 }
 0x163   : > { %v645_v31 = vmul.f32 %v3491_v6, %v638_v22 }
 0x165   : > { %v652_v33 = vadd.f32 %v3492_v15, %v645_v31 }
 0x167   : > { %v654_v34 = vpack.c.bf16 %v652_v33, %v651_v32 }
 0x171   : > { %855 = vmatmul.bf16.gmra.mxu1 %v654_v34  ;;  %836 = vmatmul.bf16.gmra.mxu0 %v654_v34 }
 0x172   : > { %874 = vmatmul.bf16.gmra.mxu2 %v654_v34 }
 0x1de   : > { %v832_v37 = vpop.f32.mrf.mxu0  ;;  %v851_v38 = vpop.f32.mrf.mxu1 }
 0x1df   : > { %v833_v40 = vadd.f32 %v832_v37, %v689_v36  ;;  %v852_v25 = vadd.f32 %v851_v38, %v690_v39 }
 0x1e1   : > { %v880_v41 = vmul.f32 0.17677669, %v833_v40  ;;  %v888_v44 = vpack.c.bf16 %v852_v25, %v852_v25 }
 0x1e3   : > { %v884_v47 = vpack.c.bf16 %v880_v41, %v880_v41  ;;  %v919_v50 = vunpack.c.l.b16 %v888_v44 }
 0x1e5   : > { %v870_v16 = vpop.f32.mrf.mxu2  ;;  %v914_v53 = vunpack.c.l.b16 %v884_v47 }
 0x1e6   : > { %v834_v42 = vpop.f32.mrf.mxu0  ;;  %v853_v43 = vpop.f32.mrf.mxu1  ;;  %v871_v63 = vadd.f32 %v870_v16, %v691_v60 }
 0x1e7   : > { %v835_v45 = vadd.f32 %v834_v42, %v689_v36  ;;  %v854_v46 = vadd.f32 %v853_v43, %v690_v39 }
 0x1e8   : > { %v892_v7 = vpack.c.bf16 %v871_v63, %v871_v63 }
 0x1e9   : > { %v881_v48 = vmul.f32 0.17677669, %v835_v45  ;;  %v889_v49 = vpack.c.bf16 %v854_v46, %v854_v46 }
 0x1ea   : > { %v1081_v15 = vunpack.c.l.b16 %v892_v7 }
 0x1eb   : > { %v885_v51 = vpack.c.bf16 %v881_v48, %v881_v48  ;;  %v920_v52 = vunpack.c.l.b16 %v889_v49 }
 0x1ed   : > { %v915_v54 = vunpack.c.l.b16 %v885_v51  ;;  %v4151_v55 = vpack.c.b16 %v920_v52, %v919_v50  ;;  %v872_v58 = vpop.f32.mrf.mxu2 }
 0x1ee   : > { %v856_v56 = vpop.f32.mrf.mxu1  ;;  %v873_v62 = vadd.f32 %v872_v58, %v691_v60  ;;  %v837_v4 = vpop.f32.mrf.mxu0 }
 0x1ef   : > { %v4153_v57 = vpack.c.b16 %v915_v54, %v914_v53  ;;  %1134 = vrot.lane.b32.xlu2 %v4151_v55, %s3889_s14  ;;  %v927_v59 = vsel %vm922_vm13, %v4151_v55, 0  ;;  %v857_v61 = vadd.f32 %v856_v56, %v690_v39  ;;  %v838_v6 = vadd.f32 %v837_v4, %v689_v36 }
 0x1f0   : > { %936 = vmatpush.bf16.xpose.msra.mxu3 %v927_v59  ;;  %v893_v2 = vpack.c.bf16 %v873_v62, %v873_v62 }
 0x1f1   : > { %1132 = vrot.lane.b32.xlu0 %v4153_v57, %s3889_s14  ;;  %v890_v0 = vpack.c.bf16 %v857_v61, %v857_v61  ;;  %v882_v14 = vmul.f32 0.17677669, %v838_v6 }
 0x1f2   : > { %v1082_v11 = vunpack.c.l.b16 %v893_v2 }
 0x1f3   : > { %v950_v8 = vunpack.c.l.b16 %v890_v0  ;;  %v886_v24 = vpack.c.bf16 %v882_v14, %v882_v14 }
 0x1f4   : > { %v4165_v18 = vpack.c.b16 %v1082_v11, %v1081_v15 }
 0x1f5   : > { %v875_v5 = vpop.f32.mrf.mxu2  ;;  %v945_v30 = vunpack.c.l.b16 %v886_v24 }
 0x1f6   : > { %v858_v1 = vpop.f32.mrf.mxu1  ;;  %v876_v13 = vadd.f32 %v875_v5, %v691_v60  ;;  %v839_v20 = vpop.f32.mrf.mxu0 }
 0x1f7   : > { %v859_v3 = vadd.f32 %v858_v1, %v690_v39  ;;  %2962 = vmatmul.msk.bf16.vlgmr.msra.gmra.mxu3 %vm922_vm13, %v4153_v57  ;;  %v840_v26 = vadd.f32 %v839_v20, %v689_v36 }
 0x1f8   : > { %v894_v21 = vpack.c.bf16 %v876_v13, %v876_v13 }
 0x1f9   : > { %v891_v9 = vpack.c.bf16 %v859_v3, %v859_v3  ;;  %v883_v28 = vmul.f32 0.17677669, %v840_v26 }
 0x1fa   : > { %v1109_v29 = vunpack.c.l.b16 %v894_v21 }
 0x1fb   : > { %v951_v12 = vunpack.c.l.b16 %v891_v9  ;;  %v887_v31 = vpack.c.bf16 %v883_v28, %v883_v28 }
 0x1fd   : > { %v4163_v17 = vpack.c.b16 %v951_v12, %v950_v8  ;;  %v877_v23 = vpop.f32.mrf.mxu2  ;;  %v946_v33 = vunpack.c.l.b16 %v887_v31 }
 0x1fe   : > { %v878_v27 = vadd.f32 %v877_v23, %v691_v60 }
 0x1ff   : > { %1158 = vrot.lane.b32.xlu0 %v4163_v17, %s3889_s14  ;;  %v957_v19 = vsel %vm922_vm13, %v4163_v17, 0  ;;  %v4176_v35 = vpack.c.b16 %v946_v33, %v945_v30 }
 0x200   : > { %966 = vmatpush.bf16.xpose.msrb.mxu3 %v957_v19  ;;  %v895_v22 = vpack.c.bf16 %v878_v27, %v878_v27 }
 0x202   : > { %v1110_v32 = vunpack.c.l.b16 %v895_v22 }
 0x204   : > { %v4174_v34 = vpack.c.b16 %v1110_v32, %v1109_v29 }
 0x207   : > { %1285 = vrot.lane.b32.xlu0 %v4165_v18, %s3889_s14  ;;  %2963 = vmatmul.msk.bf16.vlgmr.msrb.gmra.mxu3 %vm922_vm13, %v4176_v35 }
 0x208   : > { %1095 = vmatpush.bf16.msra.mxu3 %v4165_v18 }
 0x20c   : > { %1123 = vmatpush.bf16.msrb.mxu3 %v4174_v34 }
 0x20f   : > { %1408 = vrot.lane.b32.xlu0 %v4151_v55, %s3890_s30 }
 0x217   : > { %1406 = vrot.lane.b32.xlu0 %v4153_v57, %s3890_s30 }
 0x249   : > { %v1135_v36 = vpop.permute.xlu2 %1134 }
 0x24a   : > { %v1140_v37 = vsel %vm922_vm13, %v1135_v36, 0 }
 0x24b   : > { %1149 = vmatpush.bf16.xpose.msrb.mxu0 %v1140_v37 }
 0x263   : > { %v1133_v38 = vpop.permute.xlu0 %1132 }
 0x264   : > { %2966 = vmatmul.msk.bf16.vlgmr.msrb.gmra.mxu0 %vm922_vm13, %v1133_v38 }
 0x271   : > { %v1159_v39 = vpop.permute.xlu0 %1158 }
 0x272   : > { %v1164_v40 = vsel %vm922_vm13, %v1159_v39, 0 }
 0x273   : > { %1173 = vmatpush.bf16.xpose.msrb.mxu1 %v1164_v40 }
 0x279   : > { %v1286_v25 = vpop.permute.xlu0 %1285 }
 0x27a   : > { %v4188_v41 = vpop.f32.mrf.mxu3  ;;  %1298 = vmatpush.bf16.msrb.mxu2 %v1286_v25 }
 0x27b   : > { %v974_v1 = vsel %vm973_vm14, %v4188_v41, -inf }
 0x281   : > { %v1409_v16 = vpop.permute.xlu0 %1408 }
 0x282   : > { %v1414_v42 = vsel %vm922_vm13, %v1409_v16, 0  ;;  %v4191_v43 = vpop.f32.mrf.mxu3 }
 0x283   : > { %1423 = vmatpush.bf16.xpose.msra.mxu2 %v1414_v42  ;;  %v977_v44 = vsel %vm973_vm14, %v4191_v43, -inf }
 0x284   : > { %978 = vmax.xlane.f32.xlu0 %v977_v44 }
 0x28a   : > { %v4199_v61 = vpop.f32.mrf.mxu3 }
 0x28b   : > { %v980_v62 = vsel %vm973_vm14, %v4199_v61, -inf }
 0x292   : > { %v970_v63 = vpop.f32.mrf.mxu3 }
 0x293   : > { %v983_v0 = vsel %vm973_vm14, %v970_v63, -inf }
 0x2e1   : > { %v1151_v45 = vpop.f32.mrf.mxu0 }
 0x2e2   : > { %v1180_v46 = vsel %vm973_vm14, %v1151_v45, -inf }
 0x2e3   : > { %1181 = vmax.xlane.f32.xlu1 %v1180_v46 }
 0x2e9   : > { %v1153_v47 = vpop.f32.mrf.mxu0 }
 0x2ea   : > { %v1183_v48 = vsel %vm973_vm14, %v1153_v47, -inf }
 0x2eb   : > { %1184 = vmax.xlane.f32.xlu1 %v1183_v48 }
 0x356   : > { %v1182_v49 = vpop.xlane.xlu1 %1181 }
 0x357   : > { %v1192_v50 = vsub.f32 %v1151_v45, %v1182_v49  ;;  %v1407_v45 = vpop.permute.xlu0 %1406 }
 0x359   : > { %v1196_v51 = vmul.f32 1.442695, %v1192_v50 }
 0x35b   : > { %3507 = vpow2.f32 %v1196_v51 }
 0x35e   : > { %v1185_v52 = vpop.xlane.xlu1 %1184 }
 0x35f   : > { %v1193_v53 = vsub.f32 %v1153_v47, %v1185_v52  ;;  %v979_v46 = vpop.xlane.xlu0 %978 }
 0x360   : > { %v987_v49 = vsub.f32 %v4191_v43, %v979_v46 }
 0x361   : > { %v3508_v54 = vpop.eup %3507  ;;  %v1198_v56 = vmul.f32 1.442695, %v1193_v53 }
 0x362   : > { %v1204_v58 = vsel %vm973_vm14, %v3508_v54, 0.0  ;;  %v992_v51 = vmul.f32 1.442695, %v987_v49 }
 0x363   : > { %3509 = vpow2.f32 %v1198_v56  ;;  %1205 = vadd.xlane.f32.xlu1 %v1204_v58 }
 0x369   : > { %v3510_v59 = vpop.eup %3509 }
 0x36a   : > { %v1207_v60 = vsel %vm973_vm14, %v3510_v59, 0.0 }
 0x36b   : > { %1208 = vadd.xlane.f32.xlu2 %v1207_v60  ;;  %v3309_v60 = vld [vmem:[#allocation8 + $0x18] sm:$0xff] }
 0x36c   : > { %1356 = vmatpush.bf16.msra.mxu0 %v3309_v60 }
 0x373   : > { %981 = vmax.xlane.f32.xlu2 %v980_v62 }
 0x37b   : > { %984 = vmax.xlane.f32.xlu2 %v983_v0 }
 0x37c   : > { %1156 = vrot.lane.b32.xlu1 %v4176_v35, %s3889_s14 }
 0x3a6   : > { %975 = vmax.xlane.f32.xlu1 %v974_v1 }
 0x3d6   : > { %v1206_v2 = vpop.xlane.xlu1 %1205 }
 0x3d7   : > { %3511 = vrcp.f32 %v1206_v2  ;;  %v1227_v8 = vand.u32 2147483648, %v1206_v2  ;;  %vm1221_vm0 = vweird.f32 %v1206_v2  ;;  %v1225_v11 = vand.u32 2147483647, %v1206_v2 }
 0x3d9   : > { %v1228_v19 = vor.u32 1.1754944e-38, %v1227_v8  ;;  %vm1226_vm2 = vcmp.eq.f32.partialorder %v1225_v11, 8.507059e+37 }
 0x3dd   : > { %v3512_v3 = vpop.eup %3511 }
 0x3de   : > { %v1217_v4 = vmul.f32 %v3512_v3, %v1206_v2  ;;  %v1209_v5 = vpop.xlane.xlu2 %1208  ;;  %vm1222_vm15 = vweird.f32 %v3512_v3 }
 0x3df   : > { %3513 = vrcp.f32 %v1209_v5  ;;  %vm1223_vm1 = vmor %vm1221_vm0, %vm1222_vm15  ;;  %v1242_v23 = vand.u32 2147483648, %v1209_v5  ;;  %v1240_v26 = vand.u32 2147483647, %v1209_v5  ;;  %vm1236_vm4 = vweird.f32 %v1209_v5 }
 0x3e0   : > { %v1218_v6 = vsub.f32 1.0, %v1217_v4 }
 0x3e1   : > { %v1243_v22 = vor.u32 1.1754944e-38, %v1242_v23  ;;  %vm1241_vm6 = vcmp.eq.f32.partialorder %v1240_v26, 8.507059e+37 }
 0x3e2   : > { %v1219_v7 = vmul.f32 %v3512_v3, %v1218_v6 }
 0x3e4   : > { %v1220_v9 = vadd.f32 %v3512_v3, %v1219_v7 }
 0x3e5   : > { %v3514_v12 = vpop.eup %3513 }
 0x3e6   : > { %v1224_v13 = vsel %vm1223_vm1, %v3512_v3, %v1220_v9  ;;  %v1232_v14 = vmul.f32 %v3514_v12, %v1209_v5  ;;  %v982_v15 = vpop.xlane.xlu2 %981  ;;  %vm1237_vm3 = vweird.f32 %v3514_v12 }
 0x3e7   : > { %v1229_v21 = vsel %vm1226_vm2, %v1228_v19, %v1224_v13  ;;  %vm1238_vm5 = vmor %vm1236_vm4, %vm1237_vm3  ;;  %v988_v53 = vsub.f32 %v4199_v61, %v982_v15  ;;  %v3308_v61 = vld [vmem:[#allocation8 + $0x10] sm:$0xff] }
 0x3e8   : > { %v1233_v20 = vsub.f32 1.0, %v1232_v14  ;;  %v1230_v28 = vmul.f32 %v3508_v54, %v1229_v21  ;;  %1357 = vmatpush.bf16.msra.mxu0 %v3308_v61 }
 0x3e9   : > { %v994_v56 = vmul.f32 1.442695, %v988_v53 }
 0x3ea   : > { %v1234_v24 = vmul.f32 %v3514_v12, %v1233_v20  ;;  %v1276_v37 = vpack.c.bf16 %v1230_v28, %v1230_v28 }
 0x3ec   : > { %v1235_v27 = vadd.f32 %v3514_v12, %v1234_v24  ;;  %v1282_v40 = vunpack.c.l.b16 %v1276_v37 }
 0x3ee   : > { %v1239_v29 = vsel %vm1238_vm5, %v3514_v12, %v1235_v27  ;;  %v985_v30 = vpop.xlane.xlu2 %984  ;;  %v1157_v31 = vpop.permute.xlu1 %1156 }
 0x3ef   : > { %v1244_v32 = vsel %vm1241_vm6, %v1243_v22, %v1239_v29  ;;  %v989_v33 = vsub.f32 %v970_v63, %v985_v30  ;;  %2967 = vmatmul.msk.bf16.vlgmr.msrb.gmra.mxu1 %vm922_vm13, %v1157_v31 }
 0x3f0   : > { %v1245_v36 = vmul.f32 %v3510_v59, %v1244_v32 }
 0x3f1   : > { %v996_v38 = vmul.f32 1.442695, %v989_v33 }
 0x3f2   : > { %v1277_v39 = vpack.c.bf16 %v1245_v36, %v1245_v36 }
 0x3f3   : > { %3515 = vpow2.f32 %v996_v38 }
 0x3f4   : > { %v1283_v25 = vunpack.c.l.b16 %v1277_v39 }
 0x3f6   : > { %v1284_v16 = vpack.c.b16 %v1283_v25, %v1282_v40 }
 0x3f8   : > { %2968 = vmatmul.msk.bf16.vlgmr.msrb.gmra.mxu2 %vm973_vm14, %v1284_v16 }
 0x3f9   : > { %v4210_v42 = vpop.eup %3515 }
 0x3fa   : > { %v1007_v44 = vsel %vm973_vm14, %v4210_v42, 0.0 }
 0x3fb   : > { %1008 = vadd.xlane.f32.xlu1 %v1007_v44 }
 0x408   : > { %2990 = vmatmul.msk.bf16.vlgmr.msra.gmra.mxu2 %vm922_vm13, %v1407_v45 }
 0x419   : > { %v976_v47 = vpop.xlane.xlu1 %975 }
 0x41a   : > { %v986_v48 = vsub.f32 %v4188_v41, %v976_v47 }
 0x41c   : > { %v990_v50 = vmul.f32 1.442695, %v986_v48 }
 0x41e   : > { %3517 = vpow2.f32 %v990_v50 }
 0x41f   : > { %3519 = vpow2.f32 %v992_v51 }
 0x420   : > { %3521 = vpow2.f32 %v994_v56 }
 0x424   : > { %v4217_v52 = vpop.eup %3517 }
 0x425   : > { %v998_v54 = vsel %vm973_vm14, %v4217_v52, 0.0  ;;  %v4222_v58 = vpop.eup %3519 }
 0x426   : > { %999 = vadd.xlane.f32.xlu2 %v998_v54  ;;  %v1001_v41 = vsel %vm973_vm14, %v4222_v58, 0.0  ;;  %v4226_v43 = vpop.eup %3521 }
 0x427   : > { %v1004_v59 = vsel %vm973_vm14, %v4226_v43, 0.0 }
 0x42e   : > { %1002 = vadd.xlane.f32.xlu2 %v1001_v41 }
 0x436   : > { %1005 = vadd.xlane.f32.xlu2 %v1004_v59 }
 0x46c   : > { %v4230_v62 = vpop.f32.mrf.mxu1 }
 0x46d   : > { %v1186_v63 = vsel %vm973_vm14, %v4230_v62, -inf }
 0x46e   : > { %1187 = vmax.xlane.f32.xlu0 %v1186_v63  ;;  %v4247_v11 = vpop.xlane.xlu1 %1008 }
 0x46f   : > { %vm1060_vm3 = vweird.f32 %v4247_v11  ;;  %v1064_v41 = vand.u32 2147483647, %v4247_v11  ;;  %v1066_v59 = vand.u32 2147483648, %v4247_v11 }
 0x474   : > { %v4234_v0 = vpop.f32.mrf.mxu1 }
 0x475   : > { %v1189_v1 = vsel %vm973_vm14, %v4234_v0, -inf }
 0x476   : > { %1190 = vmax.xlane.f32.xlu2 %v1189_v1 }
 0x47b   : > { %v1300_v2 = vpop.f32.mrf.mxu2 }
 0x483   : > { %v1302_v3 = vpop.f32.mrf.mxu2 }
 0x484   : > { %v1330_v4 = vpack.c.bf16 %v1302_v3, %v1300_v2 }
 0x486   : > { %2978 = vmatmul.msk.bf16.vlgmr.msra.gmra.mxu0 %vm922_vm13, %v1330_v4 }
 0x48b   : > { %v4239_v5 = vpop.f32.mrf.mxu2 }
 0x48c   : > { %v1454_v6 = vsel %vm973_vm14, %v4239_v5, -inf }
 0x48d   : > { %1455 = vmax.xlane.f32.xlu1 %v1454_v6  ;;  %v1067_v6 = vor.u32 1.1754944e-38, %v1066_v59 }
 0x493   : > { %v4243_v7 = vpop.f32.mrf.mxu2 }
 0x494   : > { %v1457_v8 = vsel %vm973_vm14, %v4243_v7, -inf }
 0x495   : > { %1458 = vmax.xlane.f32.xlu0 %v1457_v8 }
 0x499   : > { %v1000_v9 = vpop.xlane.xlu2 %999 }
 0x49a   : > { %3523 = vrcp.f32 %v1000_v9  ;;  %v1021_v21 = vand.u32 2147483648, %v1000_v9  ;;  %vm1015_vm8 = vweird.f32 %v1000_v9  ;;  %v1019_v24 = vand.u32 2147483647, %v1000_v9 }
 0x49b   : > { %3525 = vrcp.f32 %v4247_v11 }
 0x49c   : > { %v1022_v30 = vor.u32 1.1754944e-38, %v1021_v21  ;;  %vm1020_vm10 = vcmp.eq.f32.partialorder %v1019_v24, 8.507059e+37 }
 0x4a0   : > { %v3524_v12 = vpop.eup %3523 }
 0x4a1   : > { %v1011_v13 = vmul.f32 %v3524_v12, %v1000_v9  ;;  %v1003_v14 = vpop.xlane.xlu2 %1002  ;;  %v4250_v19 = vpop.eup %3525  ;;  %vm1016_vm7 = vweird.f32 %v3524_v12 }
 0x4a2   : > { %3527 = vrcp.f32 %v1003_v14  ;;  %v1056_v27 = vmul.f32 %v4250_v19, %v4247_v11  ;;  %vm1017_vm9 = vmor %vm1015_vm8, %vm1016_vm7  ;;  %v1036_v36 = vand.u32 2147483648, %v1003_v14  ;;  %v1034_v38 = vand.u32 2147483647, %v1003_v14 }
 0x4a3   : > { %v1012_v15 = vsub.f32 1.0, %v1011_v13  ;;  %vm1030_vm12 = vweird.f32 %v1003_v14  ;;  %vm1061_vm1 = vweird.f32 %v4250_v19  ;;  %vm1065_vm8 = vcmp.eq.f32.partialorder %v1064_v41, 8.507059e+37 }
 0x4a4   : > { %v1057_v32 = vsub.f32 1.0, %v1056_v27  ;;  %v1037_v44 = vor.u32 1.1754944e-38, %v1036_v36  ;;  %vm1035_vm0 = vcmp.eq.f32.partialorder %v1034_v38, 8.507059e+37  ;;  %vm4266_vm4 = vmor %vm1060_vm3, %vm1061_vm1  ;;  %v3306_v38 = vld [vmem:[#allocation8] sm:$0xff] }
 0x4a5   : > { %v1013_v20 = vmul.f32 %v3524_v12, %v1012_v15 }
 0x4a6   : > { %v1058_v16 = vmul.f32 %v4250_v19, %v1057_v32 }
 0x4a7   : > { %v1014_v23 = vadd.f32 %v3524_v12, %v1013_v20 }
 0x4a8   : > { %v3528_v26 = vpop.eup %3527  ;;  %v1059_v51 = vadd.f32 %v4250_v19, %v1058_v16 }
 0x4a9   : > { %v1018_v28 = vsel %vm1017_vm9, %v3524_v12, %v1014_v23  ;;  %v1026_v22 = vmul.f32 %v3528_v26, %v1003_v14  ;;  %1310 = vrot.lane.b32.xlu0 %v4174_v34, %s3889_s14  ;;  %v1006_v29 = vpop.xlane.xlu2 %1005  ;;  %vm1031_vm11 = vweird.f32 %v3528_v26  ;;  %s4589_s14 = sld [smem:[#allocation25_spill]] }
 0x4aa   : > { %3529 = vrcp.f32 %v1006_v29  ;;  %v1023_v33 = vsel %vm1020_vm10, %v1022_v30, %v1018_v28  ;;  %vm1032_vm15 = vmor %vm1030_vm12, %vm1031_vm11  ;;  %v1049_v56 = vand.u32 2147483647, %v1006_v29  ;;  %vm1045_vm5 = vweird.f32 %v1006_v29 }
 0x4ab   : > { %v1027_v31 = vsub.f32 1.0, %v1026_v22  ;;  %v1024_v39 = vmul.f32 %v4217_v52, %v1023_v33  ;;  %v1051_v52 = vand.u32 2147483648, %v1006_v29  ;;  %v1063_v2 = vsel %vm4266_vm4, %v4250_v19, %v1059_v51 }
 0x4ac   : > { %vm1050_vm7 = vcmp.eq.f32.partialorder %v1049_v56, 8.507059e+37  ;;  %v1068_v9 = vsel %vm1065_vm8, %v1067_v6, %v1063_v2 }
 0x4ad   : > { %v1028_v37 = vmul.f32 %v3528_v26, %v1027_v31  ;;  %v1070_v48 = vpack.c.bf16 %v1024_v39, %v1024_v39  ;;  %v1052_v1 = vor.u32 1.1754944e-38, %v1051_v52  ;;  %v1069_v12 = vmul.f32 %v4210_v42, %v1068_v9 }
 0x4af   : > { %v1029_v40 = vadd.f32 %v3528_v26, %v1028_v37  ;;  %v1073_v14 = vpack.c.bf16 %v1069_v12, %v1069_v12  ;;  %v3307_v37 = vld [vmem:[#allocation8 + $0x8] sm:$0xff] }
 0x4b0   : > { %v3530_v25 = vpop.eup %3529  ;;  %1393 = vmatpush.bf16.msra.mxu1 %v3307_v37 }
 0x4b1   : > { %v1033_v45 = vsel %vm1032_vm15, %v3528_v26, %v1029_v40  ;;  %v1041_v46 = vmul.f32 %v3530_v25, %v1006_v29  ;;  %1430 = vrot.lane.b32.xlu0 %v4176_v35, %s3890_s30  ;;  %vm1046_vm2 = vweird.f32 %v3530_v25  ;;  %v1105_v19 = vunpack.c.l.b16 %v1073_v14 }
 0x4b2   : > { %v1038_v47 = vsel %vm1035_vm0, %v1037_v44, %v1033_v45  ;;  %vm1047_vm6 = vmor %vm1045_vm5, %vm1046_vm2 }
 0x4b3   : > { %v1039_v49 = vmul.f32 %v4222_v58, %v1038_v47  ;;  %v1042_v50 = vsub.f32 1.0, %v1041_v46  ;;  %v1076_v58 = vunpack.c.l.b16 %v1070_v48 }
 0x4b4   : > { %1394 = vmatpush.bf16.msra.mxu1 %v3306_v38 }
 0x4b5   : > { %v1071_v53 = vpack.c.bf16 %v1039_v49, %v1039_v49  ;;  %v1043_v54 = vmul.f32 %v3530_v25, %v1042_v50 }
 0x4b7   : > { %v1077_v61 = vunpack.c.l.b16 %v1071_v53  ;;  %v1044_v63 = vadd.f32 %v3530_v25, %v1043_v54 }
 0x4b9   : > { %v1048_v3 = vsel %vm1047_vm6, %v3530_v25, %v1044_v63  ;;  %1647 = vrot.lane.b32.xlu0 %v4153_v57, %s3891_s21  ;;  %v1078_v4 = vpack.c.b16 %v1077_v61, %v1076_v58 }
 0x4ba   : > { %v1053_v8 = vsel %vm1050_vm7, %v1052_v1, %v1048_v3 }
 0x4bb   : > { %2964 = vmatmul.msk.bf16.vlgmr.msra.gmra.mxu3 %vm973_vm14, %v1078_v4  ;;  %v1054_v11 = vmul.f32 %v4226_v43, %v1053_v8 }
 0x4bd   : > { %v1072_v13 = vpack.c.bf16 %v1054_v11, %v1054_v11 }
 0x4bf   : > { %v1104_v15 = vunpack.c.l.b16 %v1072_v13 }
 0x4c1   : > { %1671 = vrot.lane.b32.xlu0 %v4176_v35, %s3891_s21  ;;  %v1106_v20 = vpack.c.b16 %v1105_v19, %v1104_v15 }
 0x4cb   : > { %2965 = vmatmul.msk.bf16.vlgmr.msrb.gmra.mxu3 %vm973_vm14, %v1106_v20 }
 0x4e1   : > { %v1188_v57 = vpop.xlane.xlu0 %1187 }
 0x4e2   : > { %v1194_v21 = vsub.f32 %v4230_v62, %v1188_v57 }
 0x4e4   : > { %v1200_v23 = vmul.f32 1.442695, %v1194_v21 }
 0x4e6   : > { %3531 = vpow2.f32 %v1200_v23 }
 0x4e9   : > { %v1191_v24 = vpop.xlane.xlu2 %1190 }
 0x4ea   : > { %v1195_v43 = vsub.f32 %v4234_v0, %v1191_v24 }
 0x4ec   : > { %v4283_v26 = vpop.eup %3531  ;;  %v1202_v42 = vmul.f32 1.442695, %v1195_v43 }
 0x4ed   : > { %v1210_v35 = vsel %vm973_vm14, %v4283_v26, 0.0 }
 0x4ee   : > { %3533 = vpow2.f32 %v1202_v42  ;;  %1211 = vadd.xlane.f32.xlu2 %v1210_v35 }
 0x4f4   : > { %v4287_v27 = vpop.eup %3533 }
 0x4f5   : > { %v1213_v28 = vsel %vm973_vm14, %v4287_v27, 0.0 }
 0x4f6   : > { %1214 = vadd.xlane.f32.xlu1 %v1213_v28 }
 0x500   : > { %v1456_v62 = vpop.xlane.xlu1 %1455 }
 0x501   : > { %v1466_v22 = vsub.f32 %v4239_v5, %v1456_v62 }
 0x503   : > { %v1470_v29 = vmul.f32 1.442695, %v1466_v22 }
 0x505   : > { %3535 = vpow2.f32 %v1470_v29 }
 0x506   : > { %1432 = vrot.lane.b32.xlu2 %v4163_v17, %s3890_s30 }
 0x508   : > { %v1459_v0 = vpop.xlane.xlu0 %1458 }
 0x509   : > { %v1467_v30 = vsub.f32 %v4243_v7, %v1459_v0 }
 0x50b   : > { %v4295_v31 = vpop.eup %3535  ;;  %v1472_v32 = vmul.f32 1.442695, %v1467_v30 }
 0x50c   : > { %v1478_v33 = vsel %vm973_vm14, %v4295_v31, 0.0 }
 0x50d   : > { %3537 = vpow2.f32 %v1472_v32  ;;  %1479 = vadd.xlane.f32.xlu1 %v1478_v33 }
 0x50e   : > { %1559 = vrot.lane.b32.xlu2 %v4165_v18, %s3890_s30 }
 0x513   : > { %v4301_v5 = vpop.eup %3537 }
 0x514   : > { %v1481_v36 = vsel %vm973_vm14, %v4301_v5, 0.0 }
 0x515   : > { %1482 = vadd.xlane.f32.xlu1 %v1481_v36 }
 0x516   : > { %1673 = vrot.lane.b32.xlu2 %v4163_v17, %s3891_s21 }
 0x51b   : > { %v1311_v7 = vpop.permute.xlu0 %1310 }
 0x51c   : > { %1323 = vmatpush.bf16.msra.mxu3 %v1311_v7 }
 0x523   : > { %v1431_v33 = vpop.permute.xlu0 %1430 }
 0x52e   : > { %1649 = vrot.lane.b32.xlu1 %v4151_v55, %s3891_s21 }
 0x53e   : > { %v1097_v39 = vpop.f32.mrf.mxu3 }
 0x546   : > { %v1099_v40 = vpop.f32.mrf.mxu3 }
 0x547   : > { %v1130_v25 = vpack.c.bf16 %v1099_v40, %v1097_v39 }
 0x549   : > { %2988 = vmatmul.msk.bf16.vlgmr.msra.gmra.mxu1 %vm922_vm13, %v1130_v25 }
 0x54e   : > { %v1125_v16 = vpop.f32.mrf.mxu3 }
 0x556   : > { %v1127_v44 = vpop.f32.mrf.mxu3 }
 0x557   : > { %v1131_v45 = vpack.c.bf16 %v1127_v44, %v1125_v16 }
 0x559   : > { %2989 = vmatmul.msk.bf16.gmra.mxu1 %vm922_vm13, %v1131_v45 }
 0x561   : > { %v1212_v17 = vpop.xlane.xlu2 %1211 }
 0x562   : > { %3539 = vrcp.f32 %v1212_v17  ;;  %v1257_v53 = vand.u32 2147483648, %v1212_v17  ;;  %vm1251_vm10 = vweird.f32 %v1212_v17  ;;  %v1255_v56 = vand.u32 2147483647, %v1212_v17 }
 0x564   : > { %v1258_v58 = vor.u32 1.1754944e-38, %v1257_v53  ;;  %vm1256_vm12 = vcmp.eq.f32.partialorder %v1255_v56, 8.507059e+37  ;;  %v3310_v56 = vld [vmem:[#allocation8 + $0x20] sm:$0xff] }
 0x568   : > { %v3540_v46 = vpop.eup %3539 }
 0x569   : > { %v1247_v47 = vmul.f32 %v3540_v46, %v1212_v17  ;;  %v1215_v48 = vpop.xlane.xlu1 %1214  ;;  %v1433_v49 = vpop.permute.xlu2 %1432  ;;  %vm1252_vm9 = vweird.f32 %v3540_v46 }
 0x56a   : > { %3541 = vrcp.f32 %v1215_v48  ;;  %v1438_v55 = vsel %vm922_vm13, %v1433_v49, 0  ;;  %vm1253_vm11 = vmor %vm1251_vm10, %vm1252_vm9  ;;  %v1272_v63 = vand.u32 2147483648, %v1215_v48  ;;  %v1270_v3 = vand.u32 2147483647, %v1215_v48 }
 0x56b   : > { %v1248_v50 = vsub.f32 1.0, %v1247_v47  ;;  %1447 = vmatpush.bf16.xpose.msrb.mxu3 %v1438_v55  ;;  %vm1266_vm0 = vweird.f32 %v1215_v48 }
 0x56c   : > { %v1273_v8 = vor.u32 1.1754944e-38, %v1272_v63  ;;  %vm1271_vm2 = vcmp.eq.f32.partialorder %v1270_v3, 8.507059e+37 }
 0x56d   : > { %v1249_v51 = vmul.f32 %v3540_v46, %v1248_v50 }
 0x56f   : > { %v1250_v52 = vadd.f32 %v3540_v46, %v1249_v51 }
 0x570   : > { %v3542_v54 = vpop.eup %3541 }
 0x571   : > { %v1262_v41 = vmul.f32 %v3542_v54, %v1215_v48  ;;  %v1560_v59 = vpop.permute.xlu2 %1559  ;;  %v1254_v60 = vsel %vm1253_vm11, %v3540_v46, %v1250_v52  ;;  %vm1267_vm15 = vweird.f32 %v3542_v54 }
 0x572   : > { %1572 = vmatpush.bf16.msrb.mxu2 %v1560_v59  ;;  %v1259_v1 = vsel %vm1256_vm12, %v1258_v58, %v1254_v60  ;;  %vm1268_vm1 = vmor %vm1266_vm0, %vm1267_vm15 }
 0x573   : > { %v1263_v61 = vsub.f32 1.0, %v1262_v41  ;;  %v1260_v6 = vmul.f32 %v4283_v26, %v1259_v1 }
 0x575   : > { %v1264_v2 = vmul.f32 %v3542_v54, %v1263_v61  ;;  %v1278_v15 = vpack.c.bf16 %v1260_v6, %v1260_v6 }
 0x577   : > { %v1265_v4 = vadd.f32 %v3542_v54, %v1264_v2  ;;  %v1307_v57 = vunpack.c.l.b16 %v1278_v15 }
 0x579   : > { %v1269_v9 = vsel %vm1268_vm1, %v3542_v54, %v1265_v4  ;;  %v1674_v11 = vpop.permute.xlu2 %1673 }
 0x57a   : > { %v1274_v12 = vsel %vm1271_vm2, %v1273_v8, %v1269_v9  ;;  %v1679_v13 = vsel %vm922_vm13, %v1674_v11, 0 }
 0x57b   : > { %v1275_v14 = vmul.f32 %v4287_v27, %v1274_v12  ;;  %1688 = vmatpush.bf16.xpose.msra.mxu2 %v1679_v13 }
 0x57d   : > { %v1279_v19 = vpack.c.bf16 %v1275_v14, %v1275_v14 }
 0x57f   : > { %v1308_v20 = vunpack.c.l.b16 %v1279_v19 }
 0x580   : > { %v1480_v21 = vpop.xlane.xlu1 %1479 }
 0x581   : > { %3543 = vrcp.f32 %v1480_v21  ;;  %v1309_v23 = vpack.c.b16 %v1308_v20, %v1307_v57  ;;  %v1501_v28 = vand.u32 2147483648, %v1480_v21  ;;  %vm1495_vm4 = vweird.f32 %v1480_v21 }
 0x582   : > { %v1499_v27 = vand.u32 2147483647, %v1480_v21 }
 0x583   : > { %2969 = vmatmul.msk.bf16.vlgmr.msra.gmra.mxu3 %vm973_vm14, %v1309_v23  ;;  %v1502_v30 = vor.u32 1.1754944e-38, %v1501_v28 }
 0x584   : > { %vm1500_vm6 = vcmp.eq.f32.partialorder %v1499_v27, 8.507059e+37 }
 0x587   : > { %v3544_v24 = vpop.eup %3543 }
 0x588   : > { %v1491_v43 = vmul.f32 %v3544_v24, %v1480_v21  ;;  %v1483_v26 = vpop.xlane.xlu1 %1482  ;;  %vm1496_vm3 = vweird.f32 %v3544_v24 }
 0x589   : > { %3545 = vrcp.f32 %v1483_v26  ;;  %vm1497_vm5 = vmor %vm1495_vm4, %vm1496_vm3  ;;  %v1516_v7 = vand.u32 2147483648, %v1483_v26  ;;  %v1514_v38 = vand.u32 2147483647, %v1483_v26  ;;  %vm1510_vm8 = vweird.f32 %v1483_v26 }
 0x58a   : > { %v1492_v42 = vsub.f32 1.0, %v1491_v43 }
 0x58b   : > { %v1517_v25 = vor.u32 1.1754944e-38, %v1516_v7  ;;  %vm1515_vm10 = vcmp.eq.f32.partialorder %v1514_v38, 8.507059e+37 }
 0x58c   : > { %v1493_v35 = vmul.f32 %v3544_v24, %v1492_v42 }
 0x58e   : > { %v1494_v62 = vadd.f32 %v3544_v24, %v1493_v35 }
 0x58f   : > { %v3546_v22 = vpop.eup %3545 }
 0x590   : > { %v1498_v29 = vsel %vm1497_vm5, %v3544_v24, %v1494_v62  ;;  %v1506_v0 = vmul.f32 %v3546_v22, %v1483_v26  ;;  %vm1511_vm7 = vweird.f32 %v3546_v22 }
 0x591   : > { %v1503_v36 = vsel %vm1500_vm6, %v1502_v30, %v1498_v29  ;;  %vm1512_vm9 = vmor %vm1510_vm8, %vm1511_vm7 }
 0x592   : > { %v1507_v32 = vsub.f32 1.0, %v1506_v0  ;;  %v1504_v39 = vmul.f32 %v4295_v31, %v1503_v36  ;;  %v1648_v31 = vpop.permute.xlu0 %1647 }
 0x593   : > { %2991 = vmatmul.msk.bf16.vlgmr.msrb.gmra.mxu3 %vm922_vm13, %v1431_v33 }
 0x594   : > { %v1508_v37 = vmul.f32 %v3546_v22, %v1507_v32  ;;  %v1550_v45 = vpack.c.bf16 %v1504_v39, %v1504_v39 }
 0x596   : > { %v1509_v40 = vadd.f32 %v3546_v22, %v1508_v37  ;;  %v1556_v47 = vunpack.c.l.b16 %v1550_v45 }
 0x598   : > { %v1513_v16 = vsel %vm1512_vm9, %v3546_v22, %v1509_v40 }
 0x599   : > { %v1518_v44 = vsel %vm1515_vm10, %v1517_v25, %v1513_v16 }
 0x59a   : > { %v1519_v17 = vmul.f32 %v4301_v5, %v1518_v44  ;;  %v1672_v51 = vpop.permute.xlu0 %1671  ;;  %v3311_v5 = vld [vmem:[#allocation8 + $0x28] sm:$0xff] }
 0x59b   : > { %1630 = vmatpush.bf16.msrb.mxu0 %v3311_v5 }
 0x59c   : > { %v1551_v46 = vpack.c.bf16 %v1519_v17, %v1519_v17 }
 0x59e   : > { %v1557_v48 = vunpack.c.l.b16 %v1551_v46 }
 0x59f   : > { %1631 = vmatpush.bf16.msrb.mxu0 %v3310_v56 }
 0x5a0   : > { %v1650_v49 = vpop.permute.xlu1 %1649  ;;  %v1558_v50 = vpack.c.b16 %v1557_v48, %v1556_v47 }
 0x5a1   : > { %v1655_v55 = vsel %vm922_vm13, %v1650_v49, 0 }
 0x5a2   : > { %2992 = vmatmul.msk.bf16.vlgmr.msrb.gmra.mxu2 %vm973_vm14, %v1558_v50  ;;  %1664 = vmatpush.bf16.xpose.msrb.mxu1 %v1655_v55 }
 0x5a9   : > { %3004 = vmatmul.msk.bf16.vlgmr.msrb.gmra.mxu1 %vm922_vm13, %v1648_v31 }
 0x5b2   : > { %3005 = vmatmul.msk.bf16.vlgmr.msra.gmra.mxu2 %vm922_vm13, %v1672_v51 }
 0x5c6   : > { %v4323_v52 = vpop.f32.mrf.mxu1 }
 0x5ce   : > { %v4325_v54 = vpop.f32.mrf.mxu1 }
 0x5d6   : > { %v4328_v60 = vpop.f32.mrf.mxu1 }
 0x5de   : > { %v4331_v63 = vpop.f32.mrf.mxu1 }
 0x606   : > { %v1325_v53 = vpop.f32.mrf.mxu3 }
 0x60e   : > { %v1327_v41 = vpop.f32.mrf.mxu3 }
 0x60f   : > { %v1331_v59 = vpack.c.bf16 %v1327_v41, %v1325_v53 }
 0x611   : > { %2979 = vmatmul.msk.bf16.gmra.mxu0 %vm922_vm13, %v1331_v59 }
 0x616   : > { %v1449_v58 = vpop.f32.mrf.mxu3 }
 0x617   : > { %v1460_v61 = vsel %vm973_vm14, %v1449_v58, -inf }
 0x618   : > { %1461 = vmax.xlane.f32.xlu2 %v1460_v61 }
 0x61e   : > { %v1451_v1 = vpop.f32.mrf.mxu3 }
 0x61f   : > { %v1463_v2 = vsel %vm973_vm14, %v1451_v1, -inf }
 0x620   : > { %1464 = vmax.xlane.f32.xlu0 %v1463_v2 }
 0x625   : > { %v1574_v3 = vpop.f32.mrf.mxu2 }
 0x626   : > { %v1666_v4 = vpop.f32.mrf.mxu1 }
 0x627   : > { %v1695_v6 = vsel %vm973_vm14, %v1666_v4, -inf }
 0x628   : > { %1696 = vmax.xlane.f32.xlu1 %v1695_v6 }
 0x62d   : > { %v1576_v8 = vpop.f32.mrf.mxu2 }
 0x62e   : > { %v1604_v9 = vpack.c.bf16 %v1576_v8, %v1574_v3  ;;  %v1668_v11 = vpop.f32.mrf.mxu1 }
 0x62f   : > { %v1698_v12 = vsel %vm973_vm14, %v1668_v11, -inf }
 0x630   : > { %3002 = vmatmul.msk.bf16.vlgmr.msrb.gmra.mxu0 %vm922_vm13, %v1604_v9  ;;  %1699 = vmax.xlane.f32.xlu2 %v1698_v12 }
 0x635   : > { %v4337_v13 = vpop.f32.mrf.mxu2 }
 0x636   : > { %v1701_v33 = vsel %vm973_vm14, %v4337_v13, -inf }
 0x63d   : > { %v1692_v14 = vpop.f32.mrf.mxu2 }
 0x63e   : > { %v1704_v15 = vsel %vm973_vm14, %v1692_v14, -inf }
 0x63f   : > { %1705 = vmax.xlane.f32.xlu1 %v1704_v15 }
 0x68b   : > { %v1462_v19 = vpop.xlane.xlu2 %1461 }
 0x68c   : > { %v1468_v20 = vsub.f32 %v1449_v58, %v1462_v19 }
 0x68e   : > { %v1474_v57 = vmul.f32 1.442695, %v1468_v20 }
 0x690   : > { %3547 = vpow2.f32 %v1474_v57 }
 0x693   : > { %v1465_v21 = vpop.xlane.xlu0 %1464 }
 0x694   : > { %v1469_v23 = vsub.f32 %v1451_v1, %v1465_v21 }
 0x696   : > { %v4340_v24 = vpop.eup %3547  ;;  %v1476_v43 = vmul.f32 1.442695, %v1469_v23 }
 0x697   : > { %v1484_v26 = vsel %vm973_vm14, %v4340_v24, 0.0 }
 0x698   : > { %3549 = vpow2.f32 %v1476_v43  ;;  %1485 = vadd.xlane.f32.xlu2 %v1484_v26 }
 0x69b   : > { %v1697_v42 = vpop.xlane.xlu1 %1696 }
 0x69c   : > { %v1707_v35 = vsub.f32 %v1666_v4, %v1697_v42 }
 0x69e   : > { %v1711_v28 = vmul.f32 1.442695, %v1707_v35  ;;  %v3550_v62 = vpop.eup %3549 }
 0x69f   : > { %v1487_v27 = vsel %vm973_vm14, %v3550_v62, 0.0 }
 0x6a0   : > { %3551 = vpow2.f32 %v1711_v28  ;;  %1488 = vadd.xlane.f32.xlu0 %v1487_v27 }
 0x6a3   : > { %v1700_v22 = vpop.xlane.xlu2 %1699 }
 0x6a4   : > { %v1708_v29 = vsub.f32 %v1668_v11, %v1700_v22 }
 0x6a6   : > { %v4345_v0 = vpop.eup %3551  ;;  %v1713_v30 = vmul.f32 1.442695, %v1708_v29 }
 0x6a7   : > { %v1719_v32 = vsel %vm973_vm14, %v4345_v0, 0.0 }
 0x6a8   : > { %3553 = vpow2.f32 %v1713_v30  ;;  %1720 = vadd.xlane.f32.xlu1 %v1719_v32  ;;  %1702 = vmax.xlane.f32.xlu0 %v1701_v33 }
 0x6ae   : > { %v4351_v36 = vpop.eup %3553 }
 0x6af   : > { %v1722_v7 = vsel %vm973_vm14, %v4351_v36, 0.0 }
 0x6b0   : > { %1723 = vadd.xlane.f32.xlu2 %v1722_v7 }
 0x6b2   : > { %v1706_v37 = vpop.xlane.xlu1 %1705 }
 0x6b3   : > { %v1710_v38 = vsub.f32 %v1692_v14, %v1706_v37 }
 0x6b5   : > { %v1717_v39 = vmul.f32 1.442695, %v1710_v38 }
 0x6b7   : > { %3555 = vpow2.f32 %v1717_v39 }
 0x6bc   : > { %1584 = vrot.lane.b32.xlu0 %v4174_v34, %s3890_s30  ;;  %s4504_s30 = scalar_lea.vmem [#allocation13], %s2859_s7  ;;  %s3379_s7 = sshll.u32 %s3988_s15, 5 }
 0x6bd   : > { %v4355_v40 = vpop.eup %3555  ;;  %s2721_s1 = scalar_lea.hbm %s4590_s3, %s3379_s7  ;;  %s2722_s19 = sshll.u32 %s4504_s30, 4  ;;  %s2723_s19 = int_to_ptr.vmem [resolvable:$true] %s2722_s19 }
 0x6be   : > { %v1728_v25 = vsel %vm973_vm14, %v4355_v40, 0.0  ;;  %s2724_s10 = sshll.u32 %s2721_s1, 4  ;;  %s2709_s15 = scalar_lea.sflag [#allocation4], %s4087_s23  ;;  %s2725_s10 = int_to_ptr.hbm [resolvable:$true] %s2724_s10 }
 0x6bf   : > { %1729 = vadd.xlane.f32.xlu2 %v1728_v25  ;;  %s3809_s9 = sshra.s32 %s2725_s10, 4  ;;  %s3810_s9 = int_to_ptr.hbm [resolvable:$true] %s3809_s9 }
 0x6c0   : > { %p3816_p13 = scmp.lt.s32.totalorder %s3810_s9, %s4590_s3 }
 0x6d7   : > { %1825 = vrot.lane.b32.xlu2 %v4174_v34, %s3891_s21 }
 0x70b   : > { %v1486_v16 = vpop.xlane.xlu2 %1485 }
 0x70c   : > { %3557 = vrcp.f32 %v1486_v16  ;;  %v1531_v31 = vand.u32 2147483648, %v1486_v16  ;;  %vm1525_vm12 = vweird.f32 %v1486_v16  ;;  %v1529_v5 = vand.u32 2147483647, %v1486_v16 }
 0x70e   : > { %v1532_v61 = vor.u32 1.1754944e-38, %v1531_v31  ;;  %vm1530_vm2 = vcmp.eq.f32.partialorder %v1529_v5, 8.507059e+37 }
 0x712   : > { %v3558_v44 = vpop.eup %3557 }
 0x713   : > { %v1521_v45 = vmul.f32 %v3558_v44, %v1486_v16  ;;  %v1489_v17 = vpop.xlane.xlu0 %1488  ;;  %vm1526_vm11 = vweird.f32 %v3558_v44 }
 0x714   : > { %3559 = vrcp.f32 %v1489_v17  ;;  %v1546_v34 = vand.u32 2147483648, %v1489_v17  ;;  %vm1527_vm15 = vmor %vm1525_vm12, %vm1526_vm11  ;;  %v1544_v41 = vand.u32 2147483647, %v1489_v17  ;;  %vm1540_vm1 = vweird.f32 %v1489_v17 }
 0x715   : > { %v1522_v46 = vsub.f32 1.0, %v1521_v45 }
 0x716   : > { %v1547_v2 = vor.u32 1.1754944e-38, %v1546_v34  ;;  %vm1545_vm4 = vcmp.eq.f32.partialorder %v1544_v41, 8.507059e+37 }
 0x717   : > { %v1523_v47 = vmul.f32 %v3558_v44, %v1522_v46 }
 0x719   : > { %v1524_v55 = vadd.f32 %v3558_v44, %v1523_v47 }
 0x71a   : > { %v3560_v48 = vpop.eup %3559 }
 0x71b   : > { %v1536_v49 = vmul.f32 %v3560_v48, %v1489_v17  ;;  %v1703_v50 = vpop.xlane.xlu0 %1702  ;;  %vm1541_vm0 = vweird.f32 %v3560_v48  ;;  %v1528_v58 = vsel %vm1527_vm15, %v3558_v44, %v1524_v55 }
 0x71c   : > { %v1709_v53 = vsub.f32 %v4337_v13, %v1703_v50  ;;  %vm1542_vm3 = vmor %vm1540_vm1, %vm1541_vm0  ;;  %v1533_v3 = vsel %vm1530_vm2, %v1532_v61, %v1528_v58 }
 0x71d   : > { %v1537_v51 = vsub.f32 1.0, %v1536_v49  ;;  %v1534_v9 = vmul.f32 %v4340_v24, %v1533_v3  ;;  %v1721_v24 = vpop.xlane.xlu1 %1720 }
 0x71e   : > { %v1715_v59 = vmul.f32 1.442695, %v1709_v53  ;;  %vm1736_vm11 = vweird.f32 %v1721_v24  ;;  %v1742_v47 = vand.u32 2147483648, %v1721_v24 }
 0x71f   : > { %v1538_v56 = vmul.f32 %v3560_v48, %v1537_v51  ;;  %v1552_v15 = vpack.c.bf16 %v1534_v9, %v1534_v9 }
 0x720   : > { %3561 = vpow2.f32 %v1715_v59 }
 0x721   : > { %v1539_v1 = vadd.f32 %v3560_v48, %v1538_v56  ;;  %v1581_v20 = vunpack.c.l.b16 %v1552_v15  ;;  %v1743_v56 = vor.u32 1.1754944e-38, %v1742_v47 }
 0x723   : > { %v1543_v4 = vsel %vm1542_vm3, %v3560_v48, %v1539_v1  ;;  %v1724_v14 = vpop.xlane.xlu2 %1723  ;;  %v1740_v48 = vand.u32 2147483647, %v1721_v24 }
 0x724   : > { %v1548_v6 = vsel %vm1545_vm4, %v1547_v2, %v1543_v4  ;;  %3563 = vrcp.f32 %v1724_v14  ;;  %vm1751_vm8 = vweird.f32 %v1724_v14  ;;  %v1757_v39 = vand.u32 2147483648, %v1724_v14 }
 0x725   : > { %v1549_v8 = vmul.f32 %v3550_v62, %v1548_v6  ;;  %v1755_v45 = vand.u32 2147483647, %v1724_v14  ;;  %vm1741_vm2 = vcmp.eq.f32.partialorder %v1740_v48, 8.507059e+37 }
 0x726   : > { %v4365_v11 = vpop.eup %3561  ;;  %v1758_v51 = vor.u32 1.1754944e-38, %v1757_v39 }
 0x727   : > { %v1553_v12 = vpack.c.bf16 %v1549_v8, %v1549_v8  ;;  %v1725_v13 = vsel %vm973_vm14, %v4365_v11, 0.0  ;;  %vm1756_vm0 = vcmp.eq.f32.partialorder %v1755_v45, 8.507059e+37  ;;  %v3493_v45 = vld [vmem:[%s4551_s4] ss:$0 sm:$0xff] }
 0x728   : > { %1726 = vadd.xlane.f32.xlu1 %v1725_v13 }
 0x729   : > { %v1582_v19 = vunpack.c.l.b16 %v1553_v12 }
 0x72a   : > { %v3564_v26 = vpop.eup %3563 }
 0x72b   : > { %v1583_v21 = vpack.c.b16 %v1582_v19, %v1581_v20  ;;  %v1747_v28 = vmul.f32 %v3564_v26, %v1724_v14  ;;  %vm1752_vm5 = vweird.f32 %v3564_v26 }
 0x72c   : > { %vm4372_vm9 = vmor %vm1751_vm8, %vm1752_vm5 }
 0x72d   : > { %v1748_v22 = vsub.f32 1.0, %v1747_v28  ;;  %v3312_v28 = vld [vmem:[#allocation8 + $0x30] sm:$0xff] }
 0x72e   : > { %v1585_v57 = vpop.permute.xlu0 %1584 }
 0x72f   : > { %1597 = vmatpush.bf16.msra.mxu3 %v1585_v57  ;;  %v1749_v32 = vmul.f32 %v3564_v26, %v1748_v22 }
 0x732   : > { %v1730_v23 = vpop.xlane.xlu2 %1729  ;;  %2993 = vmatmul.msk.bf16.vlgmr.msra.gmra.mxu3 %vm973_vm14, %v1583_v21 }
 0x733   : > { %3565 = vrcp.f32 %v1730_v23  ;;  %v1787_v25 = vand.u32 2147483648, %v1730_v23  ;;  %vm1781_vm10 = vweird.f32 %v1730_v23  ;;  %v1785_v17 = vand.u32 2147483647, %v1730_v23 }
 0x734   : > { %3567 = vrcp.f32 %v1721_v24 }
 0x735   : > { %v1788_v53 = vor.u32 1.1754944e-38, %v1787_v25  ;;  %vm1786_vm1 = vcmp.eq.f32.partialorder %v1785_v17, 8.507059e+37 }
 0x739   : > { %v3566_v42 = vpop.eup %3565 }
 0x73a   : > { %v1826_v43 = vpop.permute.xlu2 %1825  ;;  %v3568_v35 = vpop.eup %3567  ;;  %v1777_v62 = vmul.f32 %v3566_v42, %v1730_v23  ;;  %vm1782_vm6 = vweird.f32 %v3566_v42 }
 0x73b   : > { %1838 = vmatpush.bf16.msra.mxu1 %v1826_v43  ;;  %v1732_v27 = vmul.f32 %v3568_v35, %v1721_v24  ;;  %vm1737_vm7 = vweird.f32 %v3568_v35  ;;  %vm1783_vm12 = vmor %vm1781_vm10, %vm1782_vm6 }
 0x73c   : > { %v1778_v29 = vsub.f32 1.0, %v1777_v62  ;;  %vm4379_vm15 = vmor %vm1736_vm11, %vm1737_vm7 }
 0x73d   : > { %v1733_v30 = vsub.f32 1.0, %v1732_v27 }
 0x73e   : > { %v1779_v33 = vmul.f32 %v3566_v42, %v1778_v29 }
 0x73f   : > { %v1734_v37 = vmul.f32 %v3568_v35, %v1733_v30 }
 0x740   : > { %v1780_v38 = vadd.f32 %v3566_v42, %v1779_v33  ;;  %v1359_v33 = vpop.f32.mrf.mxu0 }
 0x741   : > { %1800 = vrot.lane.b32.xlu1 %v4165_v18, %s3891_s21  ;;  %v1750_v18 = vadd.f32 %v3564_v26, %v1749_v32  ;;  %v1735_v16 = vadd.f32 %v3568_v35, %v1734_v37  ;;  %v1397_v39 = vadd.f32 %v4323_v52, %v1359_v33  ;;  %v3142_v33 = vld [vmem:[#allocation10 + $0xf8] sm:$0xf0] }
 0x742   : > { %v1784_v50 = vsel %vm1783_vm12, %v3566_v42, %v1780_v38 }
 0x743   : > { %v1754_v49 = vsel %vm4372_vm9, %v3564_v26, %v1750_v18  ;;  %v1739_v5 = vsel %vm4379_vm15, %v3568_v35, %v1735_v16  ;;  %v1789_v59 = vsel %vm1786_vm1, %v1788_v53, %v1784_v50 }
 0x744   : > { %v1759_v41 = vsel %vm1756_vm0, %v1758_v51, %v1754_v49  ;;  %v1744_v2 = vsel %vm1741_vm2, %v1743_v56, %v1739_v5  ;;  %v1790_v4 = vmul.f32 %v4355_v40, %v1789_v59  ;;  %v3612_v51 = vld [vmem:[%s4093_s8 + $0x8] sm:$0xff]  ;;  %v3613_v59 = vld [vmem:[%s4093_s8 + $0x10] sm:$0xff] }
 0x745   : > { %v1760_v3 = vmul.f32 %v4351_v36, %v1759_v41  ;;  %v1745_v9 = vmul.f32 %v4345_v0, %v1744_v2 }
 0x746   : > { %v1794_v15 = vpack.c.bf16 %v1790_v4, %v1790_v4 }
 0x747   : > { %v1792_v14 = vpack.c.bf16 %v1760_v3, %v1760_v3  ;;  %v1791_v20 = vpack.c.bf16 %v1745_v9, %v1745_v9 }
 0x748   : > { %v1823_v23 = vunpack.c.l.b16 %v1794_v15 }
 0x749   : > { %v1798_v21 = vunpack.c.l.b16 %v1792_v14  ;;  %v1797_v43 = vunpack.c.l.b16 %v1791_v20 }
 0x74b   : > { %v1799_v0 = vpack.c.b16 %v1798_v21, %v1797_v43 }
 0x79b   : > { %v1727_v7 = vpop.xlane.xlu1 %1726 }
 0x79c   : > { %3569 = vrcp.f32 %v1727_v7  ;;  %v1772_v58 = vand.u32 2147483648, %v1727_v7  ;;  %v1770_v1 = vand.u32 2147483647, %v1727_v7  ;;  %vm1766_vm4 = vweird.f32 %v1727_v7 }
 0x79e   : > { %v1773_v8 = vor.u32 1.1754944e-38, %v1772_v58  ;;  %vm1771_vm6 = vcmp.eq.f32.partialorder %v1770_v1, 8.507059e+37 }
 0x7a2   : > { %v3570_v46 = vpop.eup %3569 }
 0x7a3   : > { %v1762_v55 = vmul.f32 %v3570_v46, %v1727_v7  ;;  %vm1767_vm3 = vweird.f32 %v3570_v46  ;;  %v1361_v7 = vpop.f32.mrf.mxu0 }
 0x7a4   : > { %vm1768_vm5 = vmor %vm1766_vm4, %vm1767_vm3  ;;  %v1399_v48 = vadd.f32 %v4325_v54, %v1361_v7 }
 0x7a5   : > { %v1763_v34 = vsub.f32 1.0, %v1762_v55 }
 0x7a7   : > { %v1764_v61 = vmul.f32 %v3570_v46, %v1763_v34 }
 0x7a9   : > { %v1765_v6 = vadd.f32 %v3570_v46, %v1764_v61 }
 0x7ab   : > { %v1769_v12 = vsel %vm1768_vm5, %v3570_v46, %v1765_v6  ;;  %v1364_v37 = vpop.f32.mrf.mxu0  ;;  %v3611_v46 = vld [vmem:[%s4093_s8] sm:$0xff] }
 0x7ac   : > { %v1774_v13 = vsel %vm1771_vm6, %v1773_v8, %v1769_v12  ;;  %v1402_v5 = vadd.f32 %v4328_v60, %v1364_v37  ;;  %v3614_v60 = vld [vmem:[%s4093_s8 + $0x18] sm:$0xff]  ;;  %v3116_v37 = vld [vmem:[#allocation10 + $0xc0] sm:$0xf]  ;;  %s3811_s8 = scalar_lea.hbm %s3810_s9, 32 }
 0x7ad   : > { %v1775_v19 = vmul.f32 %v4365_v11, %v1774_v13  ;;  %v3313_v11 = vld [vmem:[#allocation8 + $0x38] sm:$0xff]  ;;  %p3812_p1 = scmp.ne.s32.totalorder %s3810_s9, %s3811_s8  ;;  %p3817_p7 = scmp.lt.s32.totalorder %s3815_s22, %s3811_s8 }
 0x7ae   : > { %1871 = vmatpush.bf16.msrb.mxu2 %v3313_v11  ;;  %v3342_v11 = vld [vmem:[#allocation10 + $0xe4] sm:$0xf] }
 0x7af   : > { %v1793_v57 = vpack.c.bf16 %v1775_v19, %v1775_v19  ;;  %p3813_p3 = pnand %p3812_p1, %p4054_p0  ;;  %p3818_p8 = por %p3817_p7, %p3816_p13 }
 0x7b1   : > { %v1822_v36 = vunpack.c.l.b16 %v1793_v57  ;;  %p3814_p5 = pneg %p3813_p3 }
 0x7b2   : > { %1872 = vmatpush.bf16.msrb.mxu2 %v3312_v28 }
 0x7b3   : > { %v1801_v40 = vpop.permute.xlu1 %1800  ;;  %v1824_v24 = vpack.c.b16 %v1823_v23, %v1822_v36  ;;  %v1366_v18 = vpop.f32.mrf.mxu0  ;;  %p3819_p9 = pnand %p3818_p8, %p3814_p5 }
 0x7b4   : > { %1813 = vmatpush.bf16.msrb.mxu3 %v1801_v40  ;;  %v1404_v1 = vadd.f32 %v4331_v63, %v1366_v18  ;;  %v3340_v18 = vld [vmem:[#allocation10 + $0xcc] sm:$0xf0] }
 0x7b5   : > { %v1599_v26 = vpop.f32.mrf.mxu3  ;;  %3007 = vmatmul.msk.bf16.vlgmr.msra.gmra.mxu1 %vm973_vm14, %v1824_v24 }
 0x7b7   : > { %3006 = vmatmul.msk.bf16.vlgmr.msrb.gmra.mxu3 %vm973_vm14, %v1799_v0 }
 0x7bb   : > { %v1633_v38 = vpop.f32.mrf.mxu0 }
 0x7bc   : > { %v1643_v25 = vadd.f32 %v1633_v38, %v1397_v39  ;;  %v3338_v38 = vld [vmem:[#allocation10 + $0xc4] sm:$0xf]  ;;  %v3117_v39 = vor.u32 %v3340_v18, %v3116_v37 }
 0x7bd   : > { %v1601_v42 = vpop.f32.mrf.mxu3 }
 0x7be   : > { %v1605_v35 = vpack.c.bf16 %v1601_v42, %v1599_v26  ;;  %v3132_v42 = vld [vmem:[#allocation10 + $0xe0] sm:$0xf] }
 0x7c0   : > { %3003 = vmatmul.msk.bf16.gmra.mxu0 %vm922_vm13, %v1605_v35  ;;  %v3344_v35 = vld [vmem:[#allocation10 + $0xec] sm:$0xf0] }
 0x7c1   : > { %v3133_v28 = vor.u32 %v3344_v35, %v3132_v42 }
 0x7c3   : > { %v1635_v17 = vpop.f32.mrf.mxu0  ;;  %2200 = vmatpush.bf16.msra.mxu0 %v3133_v28  ;;  %v3078_v28 = vld [vmem:[#allocation10 + $0x78] sm:$0xf0] }
 0x7c4   : > { %v1644_v50 = vadd.f32 %v1635_v17, %v1399_v48 }
 0x7c7   : > { %2201 = vmatpush.bf16.msra.mxu0 %v3117_v39  ;;  %v3062_v39 = vld [vmem:[#allocation10 + $0x58] sm:$0xf0] }
 0x832   : > { %v1840_v29 = vpop.f32.mrf.mxu1 }
 0x83a   : > { %v1815_v62 = vpop.f32.mrf.mxu3  ;;  %v1842_v30 = vpop.f32.mrf.mxu1 }
 0x83b   : > { %v1846_v32 = vpack.c.bf16 %v1842_v30, %v1840_v29 }
 0x83d   : > { %v1638_v31 = vpop.f32.mrf.mxu0 }
 0x83e   : > { %v1645_v56 = vadd.f32 %v1638_v31, %v1402_v5  ;;  %v3337_v5 = vld [vmem:[#allocation10 + $0xb4] sm:$0xf0] }
 0x842   : > { %v1817_v27 = vpop.f32.mrf.mxu3 }
 0x843   : > { %v1845_v22 = vpack.c.bf16 %v1817_v27, %v1815_v62  ;;  %v3134_v62 = vld [vmem:[#allocation10 + $0xf0] sm:$0xf0]  ;;  %v3140_v27 = vld [vmem:[#allocation10 + $0xe8] sm:$0xf] }
 0x844   : > { %v3137_v29 = vor.u32 %v3342_v11, %v3134_v62  ;;  %v3327_v11 = vld [vmem:[#allocation10 + $0x6c] sm:$0xf] }
 0x845   : > { %3016 = vmatmul.msk.bf16.vlgmr.msrb.gmra.mxu2 %vm922_vm13, %v1845_v22  ;;  %v1640_v61 = vpop.f32.mrf.mxu0  ;;  %v3345_v22 = vld [vmem:[#allocation10 + $0xf4] sm:$0xf0]  ;;  %v3081_v62 = vor.u32 %v3327_v11, %v3078_v28 }
 0x846   : > { %v1646_v3 = vadd.f32 %v1640_v61, %v1404_v1  ;;  %v3141_v30 = vor.u32 %v3345_v22, %v3140_v27  ;;  %2219 = vmatpush.bf16.msra.mxu3 %v3137_v29  ;;  %v3084_v61 = vld [vmem:[#allocation10 + $0x80] sm:$0xf]  ;;  %v3332_v1 = vld [vmem:[#allocation10 + $0x8c] sm:$0xf0]  ;;  %v3322_v29 = vld [vmem:[#allocation10 + $0x44] sm:$0xf] }
 0x847   : > { %v3052_v27 = vld [vmem:[#allocation10 + $0x40] sm:$0xf]  ;;  %v3324_v22 = vld [vmem:[#allocation10 + $0x4c] sm:$0xf0] }
 0x848   : > { %2238 = vmatpush.bf16.msrb.mxu1 %v3141_v30  ;;  %v3053_v30 = vor.u32 %v3324_v22, %v3052_v27 }
 0x855   : > { %3017 = vmatmul.msk.bf16.gmra.mxu2 %vm922_vm13, %v1846_v32  ;;  %v3343_v32 = vld [vmem:[#allocation10 + $0xec] sm:$0xf] }
 0x856   : > { %v3145_v7 = vor.u32 %v3343_v32, %v3142_v33  ;;  %v3054_v32 = vld [vmem:[#allocation10 + $0x50] sm:$0xf0]  ;;  %v3060_v33 = vld [vmem:[#allocation10 + $0x48] sm:$0xf] }
 0x857   : > { %v3057_v37 = vor.u32 %v3322_v29, %v3054_v32  ;;  %v3353_v29 = vld [vmem:[#allocation11 + $0x38] sm:$0xff] }
 0x858   : > { %2257 = vmatpush.bf16.msra.mxu2 %v3145_v7  ;;  %v3325_v7 = vld [vmem:[#allocation10 + $0x54] sm:$0xf0] }
 0x859   : > { %v3061_v18 = vor.u32 %v3325_v7, %v3060_v33  ;;  %v3352_v7 = vld [vmem:[#allocation11 + $0x30] sm:$0xff] }
 0x8c8   : > { %v1874_v16 = vpop.f32.mrf.mxu2 }
 0x8c9   : > { %v1884_v44 = vadd.f32 %v1874_v16, %v1643_v25  ;;  %v3118_v25 = vld [vmem:[#allocation10 + $0xd0] sm:$0xf0]  ;;  %v3124_v16 = vld [vmem:[#allocation10 + $0xc8] sm:$0xf] }
 0x8cb   : > { %v1888_v47 = vadd.f32 %v3611_v46, %v1884_v44  ;;  %v3341_v44 = vld [vmem:[#allocation10 + $0xd4] sm:$0xf0]  ;;  %v3339_v46 = vld [vmem:[#allocation10 + $0xcc] sm:$0xf] }
 0x8cc   : > { %v3125_v17 = vor.u32 %v3341_v44, %v3124_v16  ;;  %v3036_v16 = vld [vmem:[#allocation10 + $0x20] sm:$0xf]  ;;  %v3320_v44 = vld [vmem:[#allocation10 + $0x2c] sm:$0xf0] }
 0x8cd   : > { %v4400_v49 = vadd.f32 %v3493_v45, %v1888_v47  ;;  %v3126_v47 = vld [vmem:[#allocation10 + $0xd8] sm:$0xf0] }
 0x8ce   : > { %v3129_v48 = vor.u32 %v3339_v46, %v3126_v47  ;;  %2239 = vmatpush.bf16.msrb.mxu1 %v3125_v17  ;;  %v3037_v17 = vor.u32 %v3320_v44, %v3036_v16  ;;  %v3038_v46 = vld [vmem:[#allocation10 + $0x30] sm:$0xf0]  ;;  %v3044_v47 = vld [vmem:[#allocation10 + $0x28] sm:$0xf] }
 0x8cf   : > { %1902 = vadd.xlane.f32.xlu0 %v4400_v49 }
 0x8d0   : > { %v1876_v55 = vpop.f32.mrf.mxu2  ;;  %2258 = vmatpush.bf16.msra.mxu2 %v3129_v48  ;;  %v3321_v48 = vld [vmem:[#allocation10 + $0x34] sm:$0xf0] }
 0x8d1   : > { %v1885_v52 = vadd.f32 %v1876_v55, %v1644_v50  ;;  %v3100_v50 = vld [vmem:[#allocation10 + $0xa0] sm:$0xf]  ;;  %v3336_v55 = vld [vmem:[#allocation10 + $0xac] sm:$0xf0] }
 0x8d2   : > { %v3101_v31 = vor.u32 %v3336_v55, %v3100_v50  ;;  %v3045_v55 = vor.u32 %v3321_v48, %v3044_v47 }
 0x8d3   : > { %v1889_v53 = vadd.f32 %v3612_v51, %v1885_v52  ;;  %v3334_v52 = vld [vmem:[#allocation10 + $0xa4] sm:$0xf]  ;;  %v3102_v51 = vld [vmem:[#allocation10 + $0xb0] sm:$0xf0] }
 0x8d4   : > { %2202 = vmatpush.bf16.msra.mxu0 %v3101_v31  ;;  %v3046_v31 = vld [vmem:[#allocation10 + $0x38] sm:$0xf0] }
 0x8d5   : > { %v4405_v34 = vadd.f32 %v3493_v45, %v1889_v53  ;;  %v3108_v53 = vld [vmem:[#allocation10 + $0xa8] sm:$0xf] }
 0x8d7   : > { %1904 = vadd.xlane.f32.xlu1 %v4405_v34 }
 0x8d8   : > { %v1879_v41 = vpop.f32.mrf.mxu2 }
 0x8d9   : > { %v1886_v54 = vadd.f32 %v1879_v41, %v1645_v56  ;;  %v3105_v56 = vor.u32 %v3334_v52, %v3102_v51  ;;  %v3109_v41 = vor.u32 %v3337_v5, %v3108_v53  ;;  %v3319_v52 = vld [vmem:[#allocation10 + $0x2c] sm:$0xf] }
 0x8da   : > { %v3049_v53 = vor.u32 %v3319_v52, %v3046_v31 }
 0x8db   : > { %v1890_v58 = vadd.f32 %v3613_v59, %v1886_v54  ;;  %v3335_v54 = vld [vmem:[#allocation10 + $0xac] sm:$0xf]  ;;  %v3110_v59 = vld [vmem:[#allocation10 + $0xb8] sm:$0xf0]  ;;  %2240 = vmatpush.bf16.msrb.mxu1 %v3109_v41  ;;  %v3316_v41 = vld [vmem:[#allocation10 + $0xc] sm:$0xf0] }
 0x8dd   : > { %v4410_v2 = vadd.f32 %v3493_v45, %v1890_v58  ;;  %v3113_v58 = vor.u32 %v3335_v54, %v3110_v59  ;;  %v3314_v54 = vld [vmem:[#allocation10 + $0x4] sm:$0xf] }
 0x8df   : > { %1906 = vadd.xlane.f32.xlu2 %v4410_v2  ;;  %2259 = vmatpush.bf16.msra.mxu2 %v3113_v58  ;;  %v3022_v58 = vld [vmem:[#allocation10 + $0x10] sm:$0xf0] }
 0x8e0   : > { %v1881_v4 = vpop.f32.mrf.mxu2 }
 0x8e1   : > { %v1887_v6 = vadd.f32 %v1881_v4, %v1646_v3  ;;  %v3330_v3 = vld [vmem:[#allocation10 + $0x84] sm:$0xf]  ;;  %v3085_v4 = vor.u32 %v3332_v1, %v3084_v61  ;;  %v3028_v61 = vld [vmem:[#allocation10 + $0x8] sm:$0xf]  ;;  %v3317_v1 = vld [vmem:[#allocation10 + $0x14] sm:$0xf0] }
 0x8e3   : > { %v1891_v8 = vadd.f32 %v3614_v60, %v1887_v6  ;;  %v3086_v6 = vld [vmem:[#allocation10 + $0x90] sm:$0xf0]  ;;  %v3092_v60 = vld [vmem:[#allocation10 + $0x88] sm:$0xf]  ;;  %2203 = vmatpush.bf16.msra.mxu0 %v3085_v4  ;;  %v3025_v4 = vor.u32 %v3314_v54, %v3022_v58 }
 0x8e5   : > { %v4414_v9 = vadd.f32 %v3493_v45, %v1891_v8  ;;  %v3121_v45 = vor.u32 %v3338_v38, %v3118_v25  ;;  %v3333_v8 = vld [vmem:[#allocation10 + $0x94] sm:$0xf0]  ;;  %v3323_v38 = vld [vmem:[#allocation10 + $0x4c] sm:$0xf] }
 0x8e6   : > { %v3065_v25 = vor.u32 %v3323_v38, %v3062_v39 }
 0x8e7   : > { %1908 = vadd.xlane.f32.xlu0 %v4414_v9  ;;  %2220 = vmatpush.bf16.msra.mxu3 %v3121_v45  ;;  %v3318_v45 = vld [vmem:[#allocation10 + $0x24] sm:$0xf] }
 0x8e8   : > { %v3041_v50 = vor.u32 %v3318_v45, %v3038_v46 }
 0x8eb   : > { %2221 = vmatpush.bf16.msra.mxu3 %v3105_v56  ;;  %v3020_v56 = vld [vmem:[#allocation10] sm:$0xf] }
 0x8ec   : > { %v3021_v59 = vor.u32 %v3316_v41, %v3020_v56 }
 0x942   : > { %v1903_v12 = vpop.xlane.xlu0 %1902 }
 0x943   : > { %v1910_v13 = vmul.f32 %v1903_v12, %v4115_v10  ;;  %v3089_v12 = vor.u32 %v3330_v3, %v3086_v6  ;;  %v3029_v6 = vor.u32 %v3317_v1, %v3028_v61 }
 0x945   : > { %v4419_v14 = vsub.f32 %v4400_v49, %v1910_v13  ;;  %v3093_v13 = vor.u32 %v3333_v8, %v3092_v60  ;;  %2222 = vmatpush.bf16.msra.mxu3 %v3089_v12  ;;  %v3315_v60 = vld [vmem:[#allocation10 + $0xc] sm:$0xf]  ;;  %v3030_v8 = vld [vmem:[#allocation10 + $0x18] sm:$0xf0] }
 0x946   : > { %v3033_v12 = vor.u32 %v3315_v60, %v3030_v8 }
 0x947   : > { %v1918_v63 = vmul.f32 %v4419_v14, %v4419_v14  ;;  %2241 = vmatpush.bf16.msrb.mxu1 %v3093_v13 }
 0x949   : > { %1922 = vadd.xlane.f32.xlu0 %v1918_v63  ;;  %v3331_v63 = vld [vmem:[#allocation10 + $0x8c] sm:$0xf] }
 0x94a   : > { %v1905_v15 = vpop.xlane.xlu1 %1904 }
 0x94b   : > { %v1911_v19 = vmul.f32 %v1905_v15, %v4115_v10  ;;  %v3094_v15 = vld [vmem:[#allocation10 + $0x98] sm:$0xf0] }
 0x94d   : > { %v4425_v20 = vsub.f32 %v4405_v34, %v1911_v19  ;;  %v3097_v19 = vor.u32 %v3331_v63, %v3094_v15 }
 0x94f   : > { %v1919_v57 = vmul.f32 %v4425_v20, %v4425_v20  ;;  %2260 = vmatpush.bf16.msra.mxu2 %v3097_v19 }
 0x951   : > { %1924 = vadd.xlane.f32.xlu1 %v1919_v57  ;;  %v3068_v57 = vld [vmem:[#allocation10 + $0x60] sm:$0xf] }
 0x952   : > { %v1907_v21 = vpop.xlane.xlu2 %1906 }
 0x953   : > { %v1912_v23 = vmul.f32 %v1907_v21, %v4115_v10  ;;  %v3328_v21 = vld [vmem:[#allocation10 + $0x6c] sm:$0xf0]  ;;  %2261 = vmatpush.bf16.msra.mxu2 %v3081_v62 }
 0x955   : > { %v4431_v36 = vsub.f32 %v4410_v2, %v1912_v23  ;;  %v3326_v23 = vld [vmem:[#allocation10 + $0x64] sm:$0xf] }
 0x957   : > { %v1920_v43 = vmul.f32 %v4431_v36, %v4431_v36  ;;  %2262 = vmatpush.bf16.msra.mxu2 %v3065_v25  ;;  %v3494_v25 = vld [vmem:[%s4558_s11] ss:$0 sm:$0xff] }
 0x959   : > { %1926 = vadd.xlane.f32.xlu0 %v1920_v43  ;;  %v3069_v43 = vor.u32 %v3328_v21, %v3068_v57 }
 0x95a   : > { %v1909_v40 = vpop.xlane.xlu0 %1908 }
 0x95b   : > { %v1913_v24 = vmul.f32 %v1909_v40, %v4115_v10  ;;  %v3070_v40 = vld [vmem:[#allocation10 + $0x70] sm:$0xf0]  ;;  %2204 = vmatpush.bf16.msra.mxu0 %v3069_v43  ;;  %2263 = vmatpush.bf16.msra.mxu2 %v3049_v53 }
 0x95c   : > { %v3073_v42 = vor.u32 %v3326_v23, %v3070_v40 }
 0x95d   : > { %v4437_v26 = vsub.f32 %v4414_v9, %v1913_v24  ;;  %v3076_v24 = vld [vmem:[#allocation10 + $0x68] sm:$0xf] }
 0x95e   : > { %2223 = vmatpush.bf16.msra.mxu3 %v3073_v42 }
 0x95f   : > { %v1921_v0 = vmul.f32 %v4437_v26, %v4437_v26  ;;  %2205 = vmatpush.bf16.msra.mxu0 %v3053_v30  ;;  %2264 = vmatpush.bf16.msra.mxu2 %v3033_v12  ;;  %v3369_v30 = vld [vmem:[#allocation11 + $0xb8] sm:$0xff] }
 0x960   : > { %v3361_v12 = vld [vmem:[#allocation11 + $0x78] sm:$0xff] }
 0x961   : > { %1928 = vadd.xlane.f32.xlu2 %v1921_v0  ;;  %v3329_v0 = vld [vmem:[#allocation10 + $0x74] sm:$0xf0] }
 0x962   : > { %v3077_v35 = vor.u32 %v3329_v0, %v3076_v24  ;;  %2224 = vmatpush.bf16.msra.mxu3 %v3057_v37  ;;  %v3368_v37 = vld [vmem:[#allocation11 + $0xb0] sm:$0xff] }
 0x963   : > { %2206 = vmatpush.bf16.msra.mxu0 %v3037_v17 }
 0x964   : > { %2242 = vmatpush.bf16.msrb.mxu1 %v3077_v35 }
 0x966   : > { %2225 = vmatpush.bf16.msra.mxu3 %v3041_v50 }
 0x967   : > { %2207 = vmatpush.bf16.msra.mxu0 %v3021_v59 }
 0x968   : > { %2243 = vmatpush.bf16.msrb.mxu1 %v3061_v18 }
 0x96a   : > { %2226 = vmatpush.bf16.msra.mxu3 %v3025_v4 }
 0x96b   : > { %2624 = vmatpush.bf16.msrb.mxu0 %v3353_v29  ;;  %v3372_v29 = vld [vmem:[#allocation11 + $0xd0] sm:$0xff] }
 0x96c   : > { %2244 = vmatpush.bf16.msrb.mxu1 %v3045_v55 }
 0x96e   : > { %2643 = vmatpush.bf16.msrb.mxu3 %v3361_v12 }
 0x96f   : > { %2625 = vmatpush.bf16.msrb.mxu0 %v3352_v7  ;;  %v3371_v7 = vld [vmem:[#allocation11 + $0xc8] sm:$0xff] }
 0x970   : > { %2245 = vmatpush.bf16.msrb.mxu1 %v3029_v6 }
 0x974   : > { %2662 = vmatpush.bf16.msra.mxu1 %v3369_v30  ;;  %v3346_v30 = vld [vmem:[#allocation11] sm:$0xff] }
 0x978   : > { %2663 = vmatpush.bf16.msra.mxu1 %v3368_v37  ;;  %v2030_v37 = vld [vmem:[%s4588_s16] sm:$0xf] }
 0x9bc   : > { %v1923_v51 = vpop.xlane.xlu0 %1922 }
 0x9bd   : > { %v1930_v5 = vmul.f32 %v1923_v51, %v4115_v10 }
 0x9bf   : > { %v1934_v3 = vadd.f32 1e-05, %v1930_v5 }
 0x9c1   : > { %3571 = vrsqrt.f32 %v1934_v3  ;;  %vm1944_vm14 = vweird.f32 %v1934_v3 }
 0x9c4   : > { %v1925_v13 = vpop.xlane.xlu1 %1924 }
 0x9c5   : > { %v1931_v63 = vmul.f32 %v1925_v13, %v4115_v10  ;;  %v3377_v13 = vld [vmem:[#allocation11 + $0xf8] sm:$0xff] }
 0x9c6   : > { %2681 = vmatpush.bf16.msrb.mxu2 %v3377_v13 }
 0x9c7   : > { %v3572_v15 = vpop.eup %3571  ;;  %v1935_v19 = vadd.f32 1e-05, %v1931_v63  ;;  %v3367_v63 = vld [vmem:[#allocation11 + $0xa8] sm:$0xff] }
 0x9c8   : > { %v1939_v57 = vmul.f32 %v3572_v15, %v1934_v3  ;;  %vm1945_vm13 = vweird.f32 %v3572_v15  ;;  %2664 = vmatpush.bf16.msra.mxu1 %v3367_v63 }
 0x9c9   : > { %3573 = vrsqrt.f32 %v1935_v19  ;;  %vm1946_vm7 = vmor %vm1944_vm14, %vm1945_vm13  ;;  %vm1954_vm9 = vweird.f32 %v1935_v19 }
 0x9ca   : > { %v1940_v21 = vmul.f32 %v3572_v15, %v1939_v57  ;;  %v3366_v57 = vld [vmem:[#allocation11 + $0xa0] sm:$0xff] }
 0x9cc   : > { %v1941_v23 = vmul.f32 0.5, %v1940_v21  ;;  %v1927_v43 = vpop.xlane.xlu0 %1926  ;;  %2665 = vmatpush.bf16.msra.mxu1 %v3366_v57  ;;  %v3359_v21 = vld [vmem:[#allocation11 + $0x68] sm:$0xff] }
 0x9cd   : > { %v1932_v40 = vmul.f32 %v1927_v43, %v4115_v10  ;;  %v3349_v43 = vld [vmem:[#allocation11 + $0x18] sm:$0xff] }
 0x9ce   : > { %v1942_v24 = vsub.f32 1.5, %v1941_v23  ;;  %v3375_v23 = vld [vmem:[#allocation11 + $0xe8] sm:$0xff] }
 0x9cf   : > { %v3574_v0 = vpop.eup %3573  ;;  %v1936_v42 = vadd.f32 1e-05, %v1932_v40  ;;  %v3365_v40 = vld [vmem:[#allocation11 + $0x98] sm:$0xff] }
 0x9d0   : > { %v1943_v35 = vmul.f32 %v3572_v15, %v1942_v24  ;;  %v1949_v11 = vmul.f32 %v3574_v0, %v1935_v19  ;;  %vm1955_vm8 = vweird.f32 %v3574_v0  ;;  %v3376_v19 = vld [vmem:[#allocation11 + $0xf0] sm:$0xff]  ;;  %2666 = vmatpush.bf16.msra.mxu1 %v3365_v40  ;;  %v3358_v24 = vld [vmem:[#allocation11 + $0x60] sm:$0xff] }
 0x9d1   : > { %3575 = vrsqrt.f32 %v1936_v42  ;;  %vm1956_vm10 = vmor %vm1954_vm9, %vm1955_vm8  ;;  %vm1964_vm12 = vweird.f32 %v1936_v42  ;;  %2682 = vmatpush.bf16.msrb.mxu2 %v3376_v19 }
 0x9d2   : > { %v1950_v28 = vmul.f32 %v3574_v0, %v1949_v11  ;;  %v1947_v62 = vsel %vm1946_vm7, %v3572_v15, %v1943_v35  ;;  %v3360_v15 = vld [vmem:[#allocation11 + $0x70] sm:$0xff]  ;;  %v3357_v11 = vld [vmem:[#allocation11 + $0x58] sm:$0xff] }
 0x9d3   : > { %v1978_v38 = vmul.f32 %v1947_v62, %v4419_v14  ;;  %v3495_v14 = vld [vmem:[%s4559_s12] ss:$0 sm:$0xff]  ;;  %2644 = vmatpush.bf16.msrb.mxu3 %v3360_v15  ;;  %v3364_v35 = vld [vmem:[#allocation11 + $0x90] sm:$0xff]  ;;  %v3347_v62 = vld [vmem:[#allocation11 + $0x8] sm:$0xff] }
 0x9d4   : > { %v1951_v27 = vmul.f32 0.5, %v1950_v28  ;;  %v1929_v22 = vpop.xlane.xlu2 %1928  ;;  %2667 = vmatpush.bf16.msra.mxu1 %v3364_v35  ;;  %v3373_v28 = vld [vmem:[#allocation11 + $0xd8] sm:$0xff] }
 0x9d5   : > { %v1933_v32 = vmul.f32 %v1929_v22, %v4115_v10  ;;  %v1985_v46 = vmul.f32 %v3494_v25, %v1978_v38  ;;  %2683 = vmatpush.bf16.msrb.mxu2 %v3375_v23  ;;  %v3356_v22 = vld [vmem:[#allocation11 + $0x50] sm:$0xff]  ;;  %v3354_v38 = vld [vmem:[#allocation11 + $0x40] sm:$0xff] }
 0x9d6   : > { %v1952_v33 = vsub.f32 1.5, %v1951_v27  ;;  %v3363_v27 = vld [vmem:[#allocation11 + $0x88] sm:$0xff] }
 0x9d7   : > { %v3576_v18 = vpop.eup %3575  ;;  %v1937_v39 = vadd.f32 1e-05, %v1933_v32  ;;  %v1992_v52 = vadd.f32 %v3495_v14, %v1985_v46  ;;  %2645 = vmatpush.bf16.msrb.mxu3 %v3359_v21  ;;  %v3362_v32 = vld [vmem:[#allocation11 + $0x80] sm:$0xff]  ;;  %v4466_v46 = vperm.slane %v2030_v37, 3 }
 0x9d8   : > { %v1953_v16 = vmul.f32 %v3574_v0, %v1952_v33  ;;  %v1959_v44 = vmul.f32 %v3576_v18, %v1936_v42  ;;  %vm1965_vm11 = vweird.f32 %v3576_v18  ;;  %v3348_v42 = vld [vmem:[#allocation11 + $0x10] sm:$0xff]  ;;  %2668 = vmatpush.bf16.msra.mxu1 %v3363_v27  ;;  %v3355_v33 = vld [vmem:[#allocation11 + $0x48] sm:$0xff] }
 0x9d9   : > { %3577 = vrsqrt.f32 %v1937_v39  ;;  %vm1966_vm15 = vmor %vm1964_vm12, %vm1965_vm11  ;;  %vm1974_vm1 = vweird.f32 %v1937_v39 }
 0x9da   : > { %v1957_v10 = vsel %vm1956_vm10, %v3574_v0, %v1953_v16  ;;  %v1960_v45 = vmul.f32 %v3576_v18, %v1959_v44  ;;  %v3374_v0 = vld [vmem:[#allocation11 + $0xe0] sm:$0xff] }
 0x9db   : > { %v1979_v17 = vmul.f32 %v1957_v10, %v4425_v20  ;;  %2646 = vmatpush.bf16.msrb.mxu3 %v3358_v24  ;;  %2684 = vmatpush.bf16.msrb.mxu2 %v3374_v0 }
 0x9dc   : > { %v1961_v47 = vmul.f32 0.5, %v1960_v45  ;;  %2669 = vmatpush.bf16.msra.mxu1 %v3362_v32 }
 0x9dd   : > { %v1986_v48 = vmul.f32 %v3494_v25, %v1979_v17  ;;  %v4464_v17 = vperm.slane %v2030_v37, 1 }
 0x9de   : > { %v1962_v50 = vsub.f32 1.5, %v1961_v47 }
 0x9df   : > { %v3578_v55 = vpop.eup %3577  ;;  %v1993_v31 = vadd.f32 %v3495_v14, %v1986_v48  ;;  %2647 = vmatpush.bf16.msrb.mxu3 %v3357_v11  ;;  %2685 = vmatpush.bf16.msrb.mxu2 %v3373_v28 }
 0x9e0   : > { %v1963_v51 = vmul.f32 %v3576_v18, %v1962_v50  ;;  %v1969_v53 = vmul.f32 %v3578_v55, %v1937_v39  ;;  %vm1975_vm0 = vweird.f32 %v3578_v55  ;;  %v3370_v39 = vld [vmem:[#allocation11 + $0xc0] sm:$0xff] }
 0x9e1   : > { %v1996_v5 = vpack.c.bf16 %v1993_v31, %v1992_v52  ;;  %vm1976_vm2 = vmor %vm1974_vm1, %vm1975_vm0 }
 0x9e2   : > { %v1970_v56 = vmul.f32 %v3578_v55, %v1969_v53  ;;  %v1967_v20 = vsel %vm1966_vm15, %v3576_v18, %v1963_v51  ;;  %v4458_v18 = vperm.slane %v2030_v37, 0 }
 0x9e3   : > { %2208 = vmatmul.bf16.vlgmr.msra.gmra.mxu0 %v1996_v5  ;;  %2227 = vmatmul.bf16.vlgmr.msra.gmra.mxu3 %v1996_v5  ;;  %v1980_v59 = vmul.f32 %v1967_v20, %v4431_v36  ;;  %v3351_v36 = vld [vmem:[#allocation11 + $0x28] sm:$0xff] }
 0x9e4   : > { %v1971_v41 = vmul.f32 0.5, %v1970_v56  ;;  %2246 = vmatmul.bf16.vlgmr.msrb.gmra.mxu1 %v1996_v5  ;;  %2265 = vmatmul.bf16.vlgmr.msra.gmra.mxu2 %v1996_v5 }
 0x9e5   : > { %v1987_v3 = vmul.f32 %v3494_v25, %v1980_v59  ;;  %2626 = vmatpush.bf16.msrb.mxu0 %v3351_v36  ;;  %2648 = vmatpush.bf16.msrb.mxu3 %v3356_v22 }
 0x9e6   : > { %v1972_v54 = vsub.f32 1.5, %v1971_v41  ;;  %2686 = vmatpush.bf16.msrb.mxu2 %v3372_v29 }
 0x9e7   : > { %v1994_v6 = vadd.f32 %v3495_v14, %v1987_v3 }
 0x9e8   : > { %v1973_v58 = vmul.f32 %v3578_v55, %v1972_v54 }
 0x9e9   : > { %2649 = vmatpush.bf16.msrb.mxu3 %v3355_v33 }
 0x9ea   : > { %v1977_v61 = vsel %vm1976_vm2, %v3578_v55, %v1973_v58  ;;  %2687 = vmatpush.bf16.msrb.mxu2 %v3371_v7 }
 0x9eb   : > { %v1981_v1 = vmul.f32 %v1977_v61, %v4437_v26  ;;  %v3350_v26 = vld [vmem:[#allocation11 + $0x20] sm:$0xff] }
 0x9ec   : > { %2627 = vmatpush.bf16.msrb.mxu0 %v3350_v26 }
 0x9ed   : > { %v1988_v4 = vmul.f32 %v3494_v25, %v1981_v1  ;;  %v4460_v25 = vperm.slane %v2030_v37, 2  ;;  %2650 = vmatpush.bf16.msrb.mxu3 %v3354_v38 }
 0x9ee   : > { %2688 = vmatpush.bf16.msrb.mxu2 %v3370_v39 }
 0x9ef   : > { %v1995_v60 = vadd.f32 %v3495_v14, %v1988_v4 }
 0x9f0   : > { %2628 = vmatpush.bf16.msrb.mxu0 %v3349_v43 }
 0x9f1   : > { %v1997_v8 = vpack.c.bf16 %v1995_v60, %v1994_v6 }
 0x9f3   : > { %2213 = vmatmul.bf16.gmra.mxu0 %v1997_v8  ;;  %2232 = vmatmul.bf16.gmra.mxu3 %v1997_v8 }
 0x9f4   : > { %2251 = vmatmul.bf16.gmra.mxu1 %v1997_v8  ;;  %2270 = vmatmul.bf16.gmra.mxu2 %v1997_v8 }
 0x9f5   : > { %2629 = vmatpush.bf16.msrb.mxu0 %v3348_v42 }
 0x9f9   : > { %2630 = vmatpush.bf16.msrb.mxu0 %v3347_v62 }
 0x9fd   : > { %2631 = vmatpush.bf16.msrb.mxu0 %v3346_v30 }
 0xa60   : > { %v2209_v16 = vpop.f32.mrf.mxu0 }
 0xa61   : > { %v2210_v44 = vadd.f32 %v2209_v16, %v4458_v18  ;;  %v2247_v10 = vpop.f32.mrf.mxu1 }
 0xa62   : > { %v2248_v45 = vadd.f32 %v2247_v10, %v4460_v25 }
 0xa63   : > { %v2292_v14 = vmul.f32 0.851, %v2210_v44  ;;  %v2276_v57 = vmul.f32 0.5, %v2210_v44 }
 0xa64   : > { %v2294_v47 = vmul.f32 0.851, %v2248_v45  ;;  %v2278_v40 = vmul.f32 0.5, %v2248_v45 }
 0xa65   : > { %3579 = vtanh.f32 %v2292_v14 }
 0xa66   : > { %v2228_v48 = vpop.f32.mrf.mxu3  ;;  %3581 = vtanh.f32 %v2294_v47 }
 0xa67   : > { %v2229_v50 = vadd.f32 %v2228_v48, %v4464_v17  ;;  %v2266_v55 = vpop.f32.mrf.mxu2 }
 0xa68   : > { %v2267_v52 = vadd.f32 %v2266_v55, %v4466_v46  ;;  %v2211_v31 = vpop.f32.mrf.mxu0 }
 0xa69   : > { %v2212_v51 = vadd.f32 %v2211_v31, %v4458_v18  ;;  %v2249_v53 = vpop.f32.mrf.mxu1  ;;  %v2293_v56 = vmul.f32 0.851, %v2229_v50  ;;  %v2277_v28 = vmul.f32 0.5, %v2229_v50 }
 0xa6a   : > { %v2250_v5 = vadd.f32 %v2249_v53, %v4460_v25  ;;  %v2295_v41 = vmul.f32 0.851, %v2267_v52  ;;  %v2279_v37 = vmul.f32 0.5, %v2267_v52 }
 0xa6b   : > { %v2296_v20 = vmul.f32 0.851, %v2212_v51  ;;  %v3580_v58 = vpop.eup %3579  ;;  %v2280_v21 = vmul.f32 0.5, %v2212_v51 }
 0xa6c   : > { %v2298_v54 = vmul.f32 0.851, %v2250_v5  ;;  %v3582_v3 = vpop.eup %3581  ;;  %v2324_v13 = vadd.f32 1.0, %v3580_v58  ;;  %v2282_v24 = vmul.f32 0.5, %v2250_v5 }
 0xa6d   : > { %3583 = vtanh.f32 %v2296_v20  ;;  %v2326_v15 = vadd.f32 1.0, %v3582_v3 }
 0xa6e   : > { %3585 = vtanh.f32 %v2298_v54  ;;  %v2230_v59 = vpop.f32.mrf.mxu3  ;;  %v2340_v11 = vmul.f32 %v2324_v13, %v2276_v57 }
 0xa6f   : > { %3587 = vtanh.f32 %v2293_v56  ;;  %v2231_v61 = vadd.f32 %v2230_v59, %v4464_v17  ;;  %v2268_v1 = vpop.f32.mrf.mxu2  ;;  %v2342_v22 = vmul.f32 %v2326_v15, %v2278_v40 }
 0xa70   : > { %3589 = vtanh.f32 %v2295_v41  ;;  %v2269_v4 = vadd.f32 %v2268_v1, %v4466_v46  ;;  %v2214_v6 = vpop.f32.mrf.mxu0 }
 0xa71   : > { %v2297_v60 = vmul.f32 0.851, %v2231_v61  ;;  %v4475_v8 = vadd.f32 %v2214_v6, %v4458_v18  ;;  %v2252_v12 = vpop.f32.mrf.mxu1  ;;  %v2281_v50 = vmul.f32 0.5, %v2231_v61 }
 0xa72   : > { %v2299_v36 = vmul.f32 0.851, %v2269_v4  ;;  %v4478_v19 = vadd.f32 %v2252_v12, %v4460_v25  ;;  %v2283_v52 = vmul.f32 0.5, %v2269_v4 }
 0xa73   : > { %v3584_v63 = vpop.eup %3583  ;;  %3591 = vtanh.f32 %v2297_v60  ;;  %v2300_v42 = vmul.f32 0.851, %v4475_v8  ;;  %v2284_v15 = vmul.f32 0.5, %v4475_v8 }
 0xa74   : > { %v3586_v26 = vpop.eup %3585  ;;  %v2328_v23 = vadd.f32 1.0, %v3584_v63  ;;  %3593 = vtanh.f32 %v2299_v36  ;;  %v2302_v30 = vmul.f32 0.851, %v4478_v19 }
 0xa75   : > { %v3588_v43 = vpop.eup %3587  ;;  %v2330_v0 = vadd.f32 1.0, %v3586_v26  ;;  %3595 = vtanh.f32 %v2300_v42 }
 0xa76   : > { %v3590_v35 = vpop.eup %3589  ;;  %v2344_v62 = vmul.f32 %v2328_v23, %v2280_v21  ;;  %v2233_v27 = vpop.f32.mrf.mxu3  ;;  %v2325_v7 = vadd.f32 1.0, %v3588_v43  ;;  %3597 = vtanh.f32 %v2302_v30  ;;  %v2286_v43 = vmul.f32 0.5, %v4478_v19 }
 0xa77   : > { %v2346_v29 = vmul.f32 %v2330_v0, %v2282_v24  ;;  %v4483_v32 = vadd.f32 %v2233_v27, %v4464_v17  ;;  %v2271_v33 = vpop.f32.mrf.mxu2  ;;  %v2327_v10 = vadd.f32 1.0, %v3590_v35 }
 0xa78   : > { %v2356_v38 = vpack.c.bf16 %v2344_v62, %v2340_v11  ;;  %v4486_v39 = vadd.f32 %v2271_v33, %v4466_v46  ;;  %v2216_v16 = vpop.f32.mrf.mxu0  ;;  %v2341_v56 = vmul.f32 %v2325_v7, %v2277_v28 }
 0xa79   : > { %v3592_v44 = vpop.eup %3591  ;;  %v2358_v45 = vpack.c.bf16 %v2346_v29, %v2342_v22  ;;  %v2217_v14 = vadd.f32 %v2216_v16, %v4458_v18  ;;  %v2254_v47 = vpop.f32.mrf.mxu1  ;;  %v2301_v31 = vmul.f32 0.851, %v4483_v32  ;;  %v2343_v54 = vmul.f32 %v2327_v10, %v2279_v37 }
 0xa7a   : > { %v3594_v48 = vpop.eup %3593  ;;  %v2329_v55 = vadd.f32 1.0, %v3592_v44  ;;  %v2255_v51 = vadd.f32 %v2254_v47, %v4460_v25  ;;  %2632 = vmatmul.bf16.vlgmr.msrb.gmra.mxu0 %v2356_v38  ;;  %v2303_v41 = vmul.f32 0.851, %v4486_v39  ;;  %v2285_v29 = vmul.f32 0.5, %v4483_v32  ;;  %v3496_v32 = vld [vmem:[%s4589_s14] ss:$0 sm:$0xff] }
 0xa7b   : > { %v2331_v53 = vadd.f32 1.0, %v3594_v48  ;;  %v2304_v5 = vmul.f32 0.851, %v2217_v14  ;;  %2670 = vmatmul.bf16.vlgmr.msra.gmra.mxu1 %v2358_v45  ;;  %v3596_v1 = vpop.eup %3595  ;;  %v2288_v21 = vmul.f32 0.5, %v2217_v14  ;;  %v2287_v19 = vmul.f32 0.5, %v4486_v39 }
 0xa7c   : > { %v2345_v20 = vmul.f32 %v2329_v55, %v2281_v50  ;;  %v2306_v59 = vmul.f32 0.851, %v2255_v51  ;;  %v3598_v60 = vpop.eup %3597  ;;  %v2332_v13 = vadd.f32 1.0, %v3596_v1 }
 0xa7d   : > { %v2347_v18 = vmul.f32 %v2331_v53, %v2283_v52  ;;  %3599 = vtanh.f32 %v2304_v5  ;;  %v2334_v57 = vadd.f32 1.0, %v3598_v60 }
 0xa7e   : > { %v2357_v58 = vpack.c.bf16 %v2345_v20, %v2341_v56  ;;  %3601 = vtanh.f32 %v2301_v31  ;;  %v2235_v61 = vpop.f32.mrf.mxu3  ;;  %v2348_v0 = vmul.f32 %v2332_v13, %v2284_v15 }
 0xa7f   : > { %v2359_v3 = vpack.c.bf16 %v2347_v18, %v2343_v54  ;;  %3603 = vtanh.f32 %v2306_v59  ;;  %v2236_v25 = vadd.f32 %v2235_v61, %v4464_v17  ;;  %v2273_v4 = vpop.f32.mrf.mxu2  ;;  %v2350_v28 = vmul.f32 %v2334_v57, %v2286_v43 }
 0xa80   : > { %3605 = vtanh.f32 %v2303_v41  ;;  %v2274_v6 = vadd.f32 %v2273_v4, %v4466_v46  ;;  %2651 = vmatmul.bf16.vlgmr.msrb.gmra.mxu3 %v2357_v58  ;;  %v2290_v46 = vmul.f32 0.5, %v2255_v51 }
 0xa81   : > { %v2305_v12 = vmul.f32 0.851, %v2236_v25  ;;  %2689 = vmatmul.bf16.vlgmr.msrb.gmra.mxu2 %v2359_v3  ;;  %v2289_v30 = vmul.f32 0.5, %v2236_v25 }
 0xa82   : > { %v2307_v36 = vmul.f32 0.851, %v2274_v6  ;;  %v2291_v37 = vmul.f32 0.5, %v2274_v6 }
 0xa83   : > { %v3600_v63 = vpop.eup %3599  ;;  %3607 = vtanh.f32 %v2305_v12 }
 0xa84   : > { %v3602_v26 = vpop.eup %3601  ;;  %v2336_v23 = vadd.f32 1.0, %v3600_v63  ;;  %3609 = vtanh.f32 %v2307_v36 }
 0xa85   : > { %v3604_v17 = vpop.eup %3603  ;;  %v2333_v35 = vadd.f32 1.0, %v3602_v26 }
 0xa86   : > { %v3606_v40 = vpop.eup %3605  ;;  %v2338_v24 = vadd.f32 1.0, %v3604_v17  ;;  %v2352_v42 = vmul.f32 %v2336_v23, %v2288_v21 }
 0xa87   : > { %v2335_v8 = vadd.f32 1.0, %v3606_v40  ;;  %v2349_v16 = vmul.f32 %v2333_v35, %v2285_v29 }
 0xa88   : > { %v2360_v11 = vpack.c.bf16 %v2352_v42, %v2348_v0  ;;  %v2354_v62 = vmul.f32 %v2338_v24, %v2290_v46 }
 0xa89   : > { %v3608_v27 = vpop.eup %3607  ;;  %v2351_v10 = vmul.f32 %v2335_v8, %v2287_v19 }
 0xa8a   : > { %v3610_v22 = vpop.eup %3609  ;;  %v2337_v33 = vadd.f32 1.0, %v3608_v27  ;;  %2637 = vmatmul.bf16.gmra.mxu0 %v2360_v11  ;;  %v2362_v7 = vpack.c.bf16 %v2354_v62, %v2350_v28 }
 0xa8b   : > { %v2339_v38 = vadd.f32 1.0, %v3610_v22 }
 0xa8c   : > { %2675 = vmatmul.bf16.gmra.mxu1 %v2362_v7  ;;  %v2353_v44 = vmul.f32 %v2337_v33, %v2289_v30 }
 0xa8d   : > { %v2355_v45 = vmul.f32 %v2339_v38, %v2291_v37 }
 0xa8e   : > { %v2361_v14 = vpack.c.bf16 %v2353_v44, %v2349_v16 }
 0xa8f   : > { %v2363_v47 = vpack.c.bf16 %v2355_v45, %v2351_v10 }
 0xa90   : > { %2656 = vmatmul.bf16.gmra.mxu3 %v2361_v14 }
 0xa91   : > { %2694 = vmatmul.bf16.gmra.mxu2 %v2363_v47 }
 0xaf7   : > { %v2633_v48 = vpop.f32.mrf.mxu0 }
 0xaf8   : > { %v2671_v50 = vpop.f32.mrf.mxu1  ;;  %v2634_v55 = vadd.f32 %v3496_v32, %v2633_v48 }
 0xaff   : > { %v2635_v39 = vpop.f32.mrf.mxu0 }
 0xb00   : > { %v2673_v56 = vpop.f32.mrf.mxu1  ;;  %v2636_v20 = vadd.f32 %v3496_v32, %v2635_v39 }
 0xb03   : > { %v2652_v31 = vpop.f32.mrf.mxu3 }
 0xb04   : > { %v2653_v51 = vadd.f32 %v2652_v31, %v2634_v55  ;;  %v2690_v52 = vpop.f32.mrf.mxu2 }
 0xb06   : > { %v2672_v53 = vadd.f32 %v2671_v50, %v2653_v51 }
 0xb07   : > { %v2638_v58 = vpop.f32.mrf.mxu0 }
 0xb08   : > { %v2691_v5 = vadd.f32 %v2690_v52, %v2672_v53  ;;  %v2639_v3 = vadd.f32 %v3496_v32, %v2638_v58 }
 0xb09   : > { %v2676_v4 = vpop.f32.mrf.mxu1 }
 0xb0a   : > { %v2700_v41 = vadd.f32 %v2691_v5, %v4400_v49 }
 0xb0b   : > { %v2654_v54 = vpop.f32.mrf.mxu3 }
 0xb0c   : > { %2704 = vst [vmem:[%s4504_s30] sm:$0xff] %v2700_v41  ;;  %v2655_v18 = vadd.f32 %v2654_v54, %v2636_v20  ;;  %v2692_v59 = vpop.f32.mrf.mxu2 }
 0xb0e   : > { %v2674_v61 = vadd.f32 %v2673_v56, %v2655_v18 }
 0xb0f   : > { %v2640_v13 = vpop.f32.mrf.mxu0 }
 0xb10   : > { %v2693_v1 = vadd.f32 %v2692_v59, %v2674_v61  ;;  %v2641_v63 = vadd.f32 %v3496_v32, %v2640_v13 }
 0xb12   : > { %v2701_v25 = vadd.f32 %v2693_v1, %v4405_v34  ;;  %v2678_v34 = vpop.f32.mrf.mxu1 }
 0xb13   : > { %v2657_v49 = vpop.f32.mrf.mxu3 }
 0xb14   : > { %2705 = vst [vmem:[%s4504_s30 + $0x8] sm:$0xff] %v2701_v25  ;;  %v2658_v6 = vadd.f32 %v2657_v49, %v2639_v3  ;;  %v2695_v60 = vpop.f32.mrf.mxu2 }
 0xb16   : > { %v2677_v12 = vadd.f32 %v2676_v4, %v2658_v6 }
 0xb18   : > { %v2696_v36 = vadd.f32 %v2695_v60, %v2677_v12 }
 0xb1a   : > { %v2702_v15 = vadd.f32 %v2696_v36, %v4410_v2 }
 0xb1b   : > { %v2659_v26 = vpop.f32.mrf.mxu3 }
 0xb1c   : > { %2706 = vst [vmem:[%s4504_s30 + $0x10] sm:$0xff] %v2702_v15  ;;  %v2660_v57 = vadd.f32 %v2659_v26, %v2641_v63  ;;  %v2697_v23 = vpop.f32.mrf.mxu2 }
 0xb1e   : > { %v2679_v21 = vadd.f32 %v2678_v34, %v2660_v57 }
 0xb20   : > { %v2698_v17 = vadd.f32 %v2697_v23, %v2679_v21 }
 0xb22   : > { %v2703_v43 = vadd.f32 %v2698_v17, %v4414_v9 }
 0xb24   : > { %2707 = vst [vmem:[%s4504_s30 + $0x18] sm:$0xff] %v2703_v43 }
 0xb25   : > { %3822 = shalt.err (!%p3819_p9)
}
 0xb26   : > { %s3892_s23 = smov 128   ;;  %s3893_s30 = smov 8  }
 0xb27   : > { %3402 = dma.vmem_to_hbm [thread:$0]  (%p4054_p0), %s2723_s19, 512, %s2725_s10, %s2709_s15, %s3892_s23, %s3892_s23, %s3893_s30  }
 0xb28 PF: > { %s2739_s7 = sand.u32 1, %s3861_s25   ;;  %p4591_p10 = scmp.ge.s32.totalorder %s3873_s28, 2 }
 0xb29   : > { %s2740_s21 = scalar_lea.sflag [#allocation4], %s2739_s7 }
 0xb2a   : > { %p3425_p11 = pnand %p4591_p10, %p4060_p6 }
 0xb2c   : > { %p3426_p12 = pneg %p3425_p11 }
 0xb2e   : > { %3856 = dma.done.wait (%p3426_p12), %s2740_s21, 512  }
 0xb2f   : > { %3858 = vsyncadd (%p3426_p12), %s2740_s21, 4294966784  ;;  %p29_p2 = scmp.ge.s32.totalorder %s4030_s20, 4   ;;  %s4592_s25 = smov %s3865_s26 }
 0xb30   : > { %s4593_s26 = smov %s3869_s27  ;;  %s4594_s27 = smov %s4042_s18 }
 0xb31   : > { %s4595_s28 = smov %s4030_s20  ;;  %31 = sbr.rel (!%p29_p2) target bundleno = 17 (0x11), region = 137 }
 0xb36   :  { %2746 = vsyncpa [#allocation3], 1 }
 0xb37   :  { %2748 = vsyncpa [#allocation3 + $0x1], 1 }
 0xb38   :  { %2749 = vsyncpa [#allocation6], 1 }
 0xb39   :  { %2750 = vsyncpa [#allocation9], 1 }
 0xb3a   :  { %2751 = vsyncpa [#allocation12], 1 }
 0xb3b   :  { %2752 = vsyncpa [#allocation4], 1 }
 0xb3c   :  { %2754 = vsyncpa [#allocation4 + $0x1], 1 }

</bundles_post_ra>
